<compile_context>
chip_gen: v6e
topology: v6e:2x2x1
jax: 0.10.0
libtpu: 0.0.40
codegen_flags: <defaults>
</compile_context>

<pallas_src>
import jax
import jax.numpy as jnp
from jax.experimental import pallas as pl
from jax.experimental.pallas import tpu as pltpu

_OUT_LANES = 128  # lane-dense output slab; wrapper slices back to (B, 1)


def _make_fused_kernel(num_layers, seq_len, b_pad, hidden):
    """Builds the fused (all LSTM layers + classifier) kernel body."""

    def kernel(*refs):
        n_in = 1 + 3 * num_layers + 2
        x_ref = refs[0]                              # (T*Bp, E)   bf16
        layer_refs = refs[1:1 + 3 * num_layers]      # (w_ih, w_hh, bias) * L
        w_cls_ref = refs[1 + 3 * num_layers]         # (1, H)      f32
        b_cls_ref = refs[2 + 3 * num_layers]         # (1, 1)      f32
        out_ref = refs[n_in]                         # (Bp, 128)   f32
        gx_ref = refs[n_in + 1]                      # (T*Bp, 4H)  f32 scratch
        act_ref = refs[n_in + 2]                     # (T*Bp, H)   bf16 scratch

        h_last = None
        for l in range(num_layers):
            w_ih = layer_refs[3 * l][...]            # (in_dim, 4H) bf16
            w_hh = layer_refs[3 * l + 1][...]        # (H, 4H)      bf16
            bias = layer_refs[3 * l + 2][...]        # (1, 4H)      f32

            # ---- hoisted input projection: ONE batched MXU GEMM per layer --
            x_in = x_ref[...] if l == 0 else act_ref[...]
            gx_ref[...] = (
                jnp.dot(x_in, w_ih, preferred_element_type=jnp.float32) + bias
            )

            last_layer = l == num_layers - 1

            # ---- serial recurrence: only h @ W_hh^T per timestep ----------
            def step(t, carry, _w_hh=w_hh, _last=last_layer):
                h, c = carry                         # (Bp, H) f32
                row = pl.multiple_of(t * b_pad, 8)
                gates = gx_ref[pl.ds(row, b_pad), :] + jnp.dot(
                    h.astype(jnp.bfloat16), _w_hh,
                    preferred_element_type=jnp.float32)
                i_g = jax.nn.sigmoid(gates[:, 0 * hidden:1 * hidden])
                f_g = jax.nn.sigmoid(gates[:, 1 * hidden:2 * hidden])
                g_g = jnp.tanh(gates[:, 2 * hidden:3 * hidden])
                o_g = jax.nn.sigmoid(gates[:, 3 * hidden:4 * hidden])
                c_new = f_g * c + i_g * g_g
                h_new = o_g * jnp.tanh(c_new)
                if not _last:
                    # Feed the next layer's batched input GEMM.
                    act_ref[pl.ds(row, b_pad), :] = h_new.astype(jnp.bfloat16)
                return h_new, c_new

            h0 = jnp.zeros((b_pad, hidden), jnp.float32)
            c0 = jnp.zeros((b_pad, hidden), jnp.float32)
            h_last, _ = jax.lax.fori_loop(0, seq_len, step, (h0, c0),
                                          unroll=True)

        # ---- fused classifier: VPU reduction + lane-dense store -----------
        w = w_cls_ref[...]                           # (1, H) f32
        z = jnp.sum(h_last * w, axis=-1, keepdims=True) + b_cls_ref[...]
        prob = jax.nn.sigmoid(z)                     # (Bp, 1)
        out_ref[...] = jnp.broadcast_to(prob, out_ref.shape).astype(
            out_ref.dtype)

    return kernel


def lstm_net_forward(token_ids, params):
    """token_ids: int32 (B, T) -> (B, 1) float32 probabilities."""
    B, T = token_ids.shape
    emb = params["embedding"]                        # (V, E) f32
    layers = params["lstm_layers"]
    num_layers = len(layers)
    E = emb.shape[1]
    H = layers[0]["w_hh_t"].shape[0]

    b_pad = ((B + 7) // 8) * 8                       # sublane padding

    # Embedding gather + batch padding + time-major flatten (XLA glue).
    x = jnp.take(emb, token_ids, axis=0)             # (B, T, E)
    x = jnp.pad(x, ((0, b_pad - B), (0, 0), (0, 0))) # (Bp, T, E)
    x = jnp.transpose(x, (1, 0, 2)).reshape(T * b_pad, E)   # row = t*Bp + b
    x = x.astype(jnp.bfloat16)

    args = [x]
    in_specs = [pl.BlockSpec((T * b_pad, E), lambda i: (0, 0))]
    for layer in layers:
        w_ih = layer["w_ih_t"].astype(jnp.bfloat16)  # (in_dim, 4H)
        w_hh = layer["w_hh_t"].astype(jnp.bfloat16)  # (H, 4H)
        bias = layer["bias"]                         # (1, 4H) f32
        args += [w_ih, w_hh, bias]
        in_specs += [
            pl.BlockSpec(w_ih.shape, lambda i: (0, 0)),
            pl.BlockSpec(w_hh.shape, lambda i: (0, 0)),
            pl.BlockSpec(bias.shape, lambda i: (0, 0)),
        ]
    w_cls = params["w_cls"]                          # (1, H) f32
    b_cls = params["b_cls"]                          # (1, 1) f32
    args += [w_cls, b_cls]
    in_specs += [
        pl.BlockSpec(w_cls.shape, lambda i: (0, 0)),
        pl.BlockSpec(b_cls.shape, lambda i: (0, 0)),
    ]

    kernel = _make_fused_kernel(num_layers, T, b_pad, H)

    out_padded = pl.pallas_call(
        kernel,
        out_shape=jax.ShapeDtypeStruct((b_pad, _OUT_LANES), jnp.float32),
        grid_spec=pltpu.PrefetchScalarGridSpec(
            num_scalar_prefetch=0,
            grid=(1,),
            in_specs=in_specs,
            out_specs=pl.BlockSpec((b_pad, _OUT_LANES), lambda i: (0, 0)),
            scratch_shapes=[
                pltpu.VMEM((T * b_pad, 4 * H), jnp.float32),   # hoisted x-gates
                pltpu.VMEM((T * b_pad, H), jnp.bfloat16),      # layer activations
            ],
        ),
        compiler_params=pltpu.CompilerParams(
            dimension_semantics=("arbitrary",),
        ),
    )(*args)

    return out_padded[:B, :1]


def lstm_net_reference(token_ids, params):
    """Pure-JAX f32 reference matching PyTorch eval-mode LSTM_Net."""
    x = jnp.take(params["embedding"], token_ids, axis=0)    # (B, T, E)
    for layer in params["lstm_layers"]:
        w_ih_t, w_hh_t, bias = layer["w_ih_t"], layer["w_hh_t"], layer["bias"]
        B, T, _ = x.shape
        H = w_hh_t.shape[0]
        h = jnp.zeros((B, H), jnp.float32)
        c = jnp.zeros((B, H), jnp.float32)
        ys = []
        for t in range(T):
            g = x[:, t, :] @ w_ih_t + h @ w_hh_t + bias
            i_g = jax.nn.sigmoid(g[:, 0 * H:1 * H])
            f_g = jax.nn.sigmoid(g[:, 1 * H:2 * H])
            g_g = jnp.tanh(g[:, 2 * H:3 * H])
            o_g = jax.nn.sigmoid(g[:, 3 * H:4 * H])
            c = f_g * c + i_g * g_g
            h = o_g * jnp.tanh(c)
            ys.append(h)
        x = jnp.stack(ys, axis=1)                            # (B, T, H)
    h_last = x[:, -1, :]
    return jax.nn.sigmoid(h_last @ params["w_cls"].T + params["b_cls"])


def init_params(key, vocab, embedding_dim, hidden_dim, num_layers):
    keys = jax.random.split(key, 2 + 4 * num_layers)
    params = {"embedding": jax.random.normal(
        keys[0], (vocab, embedding_dim), jnp.float32) * 0.1}

    layers = []
    kidx = 1
    in_dim = embedding_dim
    for _ in range(num_layers):
        w_ih = jax.random.normal(keys[kidx], (4 * hidden_dim, in_dim),
                                 jnp.float32) * 0.1
        w_hh = jax.random.normal(keys[kidx + 1], (4 * hidden_dim, hidden_dim),
                                 jnp.float32) * 0.1
        b_ih = jax.random.normal(keys[kidx + 2], (4 * hidden_dim,),
                                 jnp.float32) * 0.1
        b_hh = jax.random.normal(keys[kidx + 3], (4 * hidden_dim,),
                                 jnp.float32) * 0.1
        layers.append({
            "w_ih_t": w_ih.T,                        # (in_dim, 4H)
            "w_hh_t": w_hh.T,                        # (H, 4H)
            "bias": (b_ih + b_hh).reshape(1, -1),    # (1, 4H)
        })
        kidx += 4
        in_dim = hidden_dim
    params["lstm_layers"] = layers

    params["w_cls"] = jax.random.normal(keys[kidx], (1, hidden_dim),
                                        jnp.float32) * 0.1
    params["b_cls"] = jnp.zeros((1, 1), jnp.float32)
    return params


if __name__ == "__main__":
    VOCAB, EMB_DIM, HIDDEN, NUM_LAYERS, BATCH, SEQ = 32, 16, 32, 2, 2, 8

    key = jax.random.PRNGKey(0)
    pkey, ikey = jax.random.split(key)
    params = init_params(pkey, VOCAB, EMB_DIM, HIDDEN, NUM_LAYERS)
    token_ids = jax.random.randint(ikey, (BATCH, SEQ), 0, VOCAB, jnp.int32)

    out = jax.block_until_ready(lstm_net_forward(token_ids, params))
    ref = jax.block_until_ready(lstm_net_reference(token_ids, params))

    assert out.shape == (BATCH, 1)
    assert bool(jnp.all((out >= 0.0) & (out <= 1.0)))
    assert bool(jnp.max(jnp.abs(out - ref)) < 5e-2), (out, ref)
    print("KERNEL_OK")
</pallas_src>

<mosaic_0001>
module attributes {stable_mosaic.version = 11 : i64} {
  func.func @kernel(%arg0: i32, %arg1: memref<64x16xbf16, #tpu.memory_space<vmem>>, %arg2: memref<16x128xbf16, #tpu.memory_space<vmem>>, %arg3: memref<32x128xbf16, #tpu.memory_space<vmem>>, %arg4: memref<1x128xf32, #tpu.memory_space<vmem>>, %arg5: memref<32x128xbf16, #tpu.memory_space<vmem>>, %arg6: memref<32x128xbf16, #tpu.memory_space<vmem>>, %arg7: memref<1x128xf32, #tpu.memory_space<vmem>>, %arg8: memref<1x32xf32, #tpu.memory_space<vmem>>, %arg9: memref<1x1xf32, #tpu.memory_space<vmem>>, %arg10: memref<8x128xf32, #tpu.memory_space<vmem>>, %arg11: memref<64x128xf32, #tpu.memory_space<vmem>>, %arg12: memref<64x32xbf16, #tpu.memory_space<vmem>>) attributes {dimension_semantics = [#tpu.dimension_semantics<arbitrary>], iteration_bounds = array<i64: 1>, scalar_prefetch = 0 : i64, scratch_operands = 2 : i64, tpu.core_type = #tpu.core_type<tc>, window_params = [{pipeline_mode = #tpu.pipeline_mode<synchronous>, transform_indices = @transform_0, window_bounds = array<i64: 64, 16>}, {pipeline_mode = #tpu.pipeline_mode<synchronous>, transform_indices = @transform_1, window_bounds = array<i64: 16, 128>}, {pipeline_mode = #tpu.pipeline_mode<synchronous>, transform_indices = @transform_2, window_bounds = array<i64: 32, 128>}, {pipeline_mode = #tpu.pipeline_mode<synchronous>, transform_indices = @transform_3, window_bounds = array<i64: 1, 128>}, {pipeline_mode = #tpu.pipeline_mode<synchronous>, transform_indices = @transform_4, window_bounds = array<i64: 32, 128>}, {pipeline_mode = #tpu.pipeline_mode<synchronous>, transform_indices = @transform_5, window_bounds = array<i64: 32, 128>}, {pipeline_mode = #tpu.pipeline_mode<synchronous>, transform_indices = @transform_6, window_bounds = array<i64: 1, 128>}, {pipeline_mode = #tpu.pipeline_mode<synchronous>, transform_indices = @transform_7, window_bounds = array<i64: 1, 32>}, {pipeline_mode = #tpu.pipeline_mode<synchronous>, transform_indices = @transform_8, window_bounds = array<i64: 1, 1>}, {pipeline_mode = #tpu.pipeline_mode<synchronous>, transform_indices = @transform_9, window_bounds = array<i64: 8, 128>}]} {
    %c0 = arith.constant 0 : index
    %c0_0 = arith.constant 0 : index
    %0 = vector.load %arg2[%c0, %c0_0] : memref<16x128xbf16, #tpu.memory_space<vmem>>, vector<16x128xbf16>
    %c0_1 = arith.constant 0 : index
    %c0_2 = arith.constant 0 : index
    %1 = vector.load %arg3[%c0_1, %c0_2] : memref<32x128xbf16, #tpu.memory_space<vmem>>, vector<32x128xbf16>
    %c0_3 = arith.constant 0 : index
    %c0_4 = arith.constant 0 : index
    %2 = vector.load %arg4[%c0_3, %c0_4] : memref<1x128xf32, #tpu.memory_space<vmem>>, vector<1x128xf32>
    %c0_5 = arith.constant 0 : index
    %c0_6 = arith.constant 0 : index
    %3 = vector.load %arg1[%c0_5, %c0_6] : memref<64x16xbf16, #tpu.memory_space<vmem>>, vector<64x16xbf16>
    %cst = arith.constant dense<0.000000e+00> : vector<64x128xf32>
    %4 = tpu.matmul %3, %0, %cst {dimension_numbers = #tpu.dot_dimension_numbers<[1], [0], [0], [1], [0, 0, 1, 1], [], []>} : vector<64x16xbf16>, vector<16x128xbf16>, vector<64x128xf32> -> vector<64x128xf32>
    %5 = vector.broadcast %2 : vector<1x128xf32> to vector<64x128xf32>
    %6 = arith.addf %4, %5 : vector<64x128xf32>
    %c0_7 = arith.constant 0 : index
    %c0_8 = arith.constant 0 : index
    %7 = vector.load %arg11[%c0_7, %c0_8] : memref<64x128xf32, #tpu.memory_space<vmem>>, vector<64x128xf32>
    tpu.vector_store %arg11[%c0_7, %c0_8], %6 {strides = array<i32>} : memref<64x128xf32, #tpu.memory_space<vmem>>, vector<64x128xf32>,
    %cst_9 = arith.constant 0.000000e+00 : f32
    %8 = vector.broadcast %cst_9 : f32 to vector<8x32xf32>
    %cst_10 = arith.constant 0.000000e+00 : f32
    %9 = vector.broadcast %cst_10 : f32 to vector<8x32xf32>
    %c0_i32 = arith.constant 0 : i32
    %c8_i32 = arith.constant 8 : i32
    %10 = arith.muli %c0_i32, %c8_i32 : i32
    %11 = tpu.assume_multiple %10, 8 : i32
    %12 = arith.index_cast %11 : i32 to index
    %c0_11 = arith.constant 0 : index
    %13 = vector.load %arg11[%12, %c0_11] : memref<64x128xf32, #tpu.memory_space<vmem>>, vector<8x128xf32>
    %14 = arith.truncf %8 : vector<8x32xf32> to vector<8x32xbf16>
    %cst_12 = arith.constant dense<0.000000e+00> : vector<8x128xf32>
    %15 = tpu.matmul %14, %1, %cst_12 {dimension_numbers = #tpu.dot_dimension_numbers<[1], [0], [0], [1], [0, 0, 1, 1], [], []>} : vector<8x32xbf16>, vector<32x128xbf16>, vector<8x128xf32> -> vector<8x128xf32>
    %16 = arith.addf %13, %15 : vector<8x128xf32>
    %17 = vector.extract_strided_slice %16 {offsets = [0, 0], sizes = [8, 32], strides = [1, 1]} : vector<8x128xf32> to vector<8x32xf32>
    %18 = arith.negf %17 : vector<8x32xf32>
    %19 = math.exp %18 : vector<8x32xf32>
    %cst_13 = arith.constant 1.000000e+00 : f32
    %20 = vector.broadcast %cst_13 : f32 to vector<8x32xf32>
    %21 = arith.addf %20, %19 : vector<8x32xf32>
    %22 = arith.divf %20, %21 : vector<8x32xf32>
    %23 = vector.extract_strided_slice %16 {offsets = [0, 32], sizes = [8, 32], strides = [1, 1]} : vector<8x128xf32> to vector<8x32xf32>
    %24 = arith.negf %23 : vector<8x32xf32>
    %25 = math.exp %24 : vector<8x32xf32>
    %cst_14 = arith.constant 1.000000e+00 : f32
    %26 = vector.broadcast %cst_14 : f32 to vector<8x32xf32>
    %27 = arith.addf %26, %25 : vector<8x32xf32>
    %28 = arith.divf %26, %27 : vector<8x32xf32>
    %29 = vector.extract_strided_slice %16 {offsets = [0, 64], sizes = [8, 32], strides = [1, 1]} : vector<8x128xf32> to vector<8x32xf32>
    %30 = math.tanh %29 : vector<8x32xf32>
    %31 = vector.extract_strided_slice %16 {offsets = [0, 96], sizes = [8, 32], strides = [1, 1]} : vector<8x128xf32> to vector<8x32xf32>
    %32 = arith.negf %31 : vector<8x32xf32>
    %33 = math.exp %32 : vector<8x32xf32>
    %cst_15 = arith.constant 1.000000e+00 : f32
    %34 = vector.broadcast %cst_15 : f32 to vector<8x32xf32>
    %35 = arith.addf %34, %33 : vector<8x32xf32>
    %36 = arith.divf %34, %35 : vector<8x32xf32>
    %37 = arith.mulf %28, %9 : vector<8x32xf32>
    %38 = arith.mulf %22, %30 : vector<8x32xf32>
    %39 = arith.addf %37, %38 : vector<8x32xf32>
    %40 = math.tanh %39 : vector<8x32xf32>
    %41 = arith.mulf %36, %40 : vector<8x32xf32>
    %42 = arith.truncf %41 : vector<8x32xf32> to vector<8x32xbf16>
    %43 = arith.index_cast %11 : i32 to index
    %c0_16 = arith.constant 0 : index
    %44 = vector.load %arg12[%43, %c0_16] : memref<64x32xbf16, #tpu.memory_space<vmem>>, vector<8x32xbf16>
    tpu.vector_store %arg12[%43, %c0_16], %42 {strides = array<i32>} : memref<64x32xbf16, #tpu.memory_space<vmem>>, vector<8x32xbf16>,
    %c1_i32 = arith.constant 1 : i32
    %c8_i32_17 = arith.constant 8 : i32
    %45 = arith.muli %c1_i32, %c8_i32_17 : i32
    %46 = tpu.assume_multiple %45, 8 : i32
    %47 = arith.index_cast %46 : i32 to index
    %c0_18 = arith.constant 0 : index
    %48 = vector.load %arg11[%47, %c0_18] : memref<64x128xf32, #tpu.memory_space<vmem>>, vector<8x128xf32>
    %49 = arith.truncf %41 : vector<8x32xf32> to vector<8x32xbf16>
    %cst_19 = arith.constant dense<0.000000e+00> : vector<8x128xf32>
    %50 = tpu.matmul %49, %1, %cst_19 {dimension_numbers = #tpu.dot_dimension_numbers<[1], [0], [0], [1], [0, 0, 1, 1], [], []>} : vector<8x32xbf16>, vector<32x128xbf16>, vector<8x128xf32> -> vector<8x128xf32>
    %51 = arith.addf %48, %50 : vector<8x128xf32>
    %52 = vector.extract_strided_slice %51 {offsets = [0, 0], sizes = [8, 32], strides = [1, 1]} : vector<8x128xf32> to vector<8x32xf32>
    %53 = arith.negf %52 : vector<8x32xf32>
    %54 = math.exp %53 : vector<8x32xf32>
    %cst_20 = arith.constant 1.000000e+00 : f32
    %55 = vector.broadcast %cst_20 : f32 to vector<8x32xf32>
    %56 = arith.addf %55, %54 : vector<8x32xf32>
    %57 = arith.divf %55, %56 : vector<8x32xf32>
    %58 = vector.extract_strided_slice %51 {offsets = [0, 32], sizes = [8, 32], strides = [1, 1]} : vector<8x128xf32> to vector<8x32xf32>
    %59 = arith.negf %58 : vector<8x32xf32>
    %60 = math.exp %59 : vector<8x32xf32>
    %cst_21 = arith.constant 1.000000e+00 : f32
    %61 = vector.broadcast %cst_21 : f32 to vector<8x32xf32>
    %62 = arith.addf %61, %60 : vector<8x32xf32>
    %63 = arith.divf %61, %62 : vector<8x32xf32>
    %64 = vector.extract_strided_slice %51 {offsets = [0, 64], sizes = [8, 32], strides = [1, 1]} : vector<8x128xf32> to vector<8x32xf32>
    %65 = math.tanh %64 : vector<8x32xf32>
    %66 = vector.extract_strided_slice %51 {offsets = [0, 96], sizes = [8, 32], strides = [1, 1]} : vector<8x128xf32> to vector<8x32xf32>
    %67 = arith.negf %66 : vector<8x32xf32>
    %68 = math.exp %67 : vector<8x32xf32>
    %cst_22 = arith.constant 1.000000e+00 : f32
    %69 = vector.broadcast %cst_22 : f32 to vector<8x32xf32>
    %70 = arith.addf %69, %68 : vector<8x32xf32>
    %71 = arith.divf %69, %70 : vector<8x32xf32>
    %72 = arith.mulf %63, %39 : vector<8x32xf32>
    %73 = arith.mulf %57, %65 : vector<8x32xf32>
    %74 = arith.addf %72, %73 : vector<8x32xf32>
    %75 = math.tanh %74 : vector<8x32xf32>
    %76 = arith.mulf %71, %75 : vector<8x32xf32>
    %77 = arith.truncf %76 : vector<8x32xf32> to vector<8x32xbf16>
    %78 = arith.index_cast %46 : i32 to index
    %c0_23 = arith.constant 0 : index
    %79 = vector.load %arg12[%78, %c0_23] : memref<64x32xbf16, #tpu.memory_space<vmem>>, vector<8x32xbf16>
    tpu.vector_store %arg12[%78, %c0_23], %77 {strides = array<i32>} : memref<64x32xbf16, #tpu.memory_space<vmem>>, vector<8x32xbf16>,
    %c2_i32 = arith.constant 2 : i32
    %c8_i32_24 = arith.constant 8 : i32
    %80 = arith.muli %c2_i32, %c8_i32_24 : i32
    %81 = tpu.assume_multiple %80, 8 : i32
    %82 = arith.index_cast %81 : i32 to index
    %c0_25 = arith.constant 0 : index
    %83 = vector.load %arg11[%82, %c0_25] : memref<64x128xf32, #tpu.memory_space<vmem>>, vector<8x128xf32>
    %84 = arith.truncf %76 : vector<8x32xf32> to vector<8x32xbf16>
    %cst_26 = arith.constant dense<0.000000e+00> : vector<8x128xf32>
    %85 = tpu.matmul %84, %1, %cst_26 {dimension_numbers = #tpu.dot_dimension_numbers<[1], [0], [0], [1], [0, 0, 1, 1], [], []>} : vector<8x32xbf16>, vector<32x128xbf16>, vector<8x128xf32> -> vector<8x128xf32>
    %86 = arith.addf %83, %85 : vector<8x128xf32>
    %87 = vector.extract_strided_slice %86 {offsets = [0, 0], sizes = [8, 32], strides = [1, 1]} : vector<8x128xf32> to vector<8x32xf32>
    %88 = arith.negf %87 : vector<8x32xf32>
    %89 = math.exp %88 : vector<8x32xf32>
    %cst_27 = arith.constant 1.000000e+00 : f32
    %90 = vector.broadcast %cst_27 : f32 to vector<8x32xf32>
    %91 = arith.addf %90, %89 : vector<8x32xf32>
    %92 = arith.divf %90, %91 : vector<8x32xf32>
    %93 = vector.extract_strided_slice %86 {offsets = [0, 32], sizes = [8, 32], strides = [1, 1]} : vector<8x128xf32> to vector<8x32xf32>
    %94 = arith.negf %93 : vector<8x32xf32>
    %95 = math.exp %94 : vector<8x32xf32>
    %cst_28 = arith.constant 1.000000e+00 : f32
    %96 = vector.broadcast %cst_28 : f32 to vector<8x32xf32>
    %97 = arith.addf %96, %95 : vector<8x32xf32>
    %98 = arith.divf %96, %97 : vector<8x32xf32>
    %99 = vector.extract_strided_slice %86 {offsets = [0, 64], sizes = [8, 32], strides = [1, 1]} : vector<8x128xf32> to vector<8x32xf32>
    %100 = math.tanh %99 : vector<8x32xf32>
    %101 = vector.extract_strided_slice %86 {offsets = [0, 96], sizes = [8, 32], strides = [1, 1]} : vector<8x128xf32> to vector<8x32xf32>
    %102 = arith.negf %101 : vector<8x32xf32>
    %103 = math.exp %102 : vector<8x32xf32>
    %cst_29 = arith.constant 1.000000e+00 : f32
    %104 = vector.broadcast %cst_29 : f32 to vector<8x32xf32>
    %105 = arith.addf %104, %103 : vector<8x32xf32>
    %106 = arith.divf %104, %105 : vector<8x32xf32>
    %107 = arith.mulf %98, %74 : vector<8x32xf32>
    %108 = arith.mulf %92, %100 : vector<8x32xf32>
    %109 = arith.addf %107, %108 : vector<8x32xf32>
    %110 = math.tanh %109 : vector<8x32xf32>
    %111 = arith.mulf %106, %110 : vector<8x32xf32>
    %112 = arith.truncf %111 : vector<8x32xf32> to vector<8x32xbf16>
    %113 = arith.index_cast %81 : i32 to index
    %c0_30 = arith.constant 0 : index
    %114 = vector.load %arg12[%113, %c0_30] : memref<64x32xbf16, #tpu.memory_space<vmem>>, vector<8x32xbf16>
    tpu.vector_store %arg12[%113, %c0_30], %112 {strides = array<i32>} : memref<64x32xbf16, #tpu.memory_space<vmem>>, vector<8x32xbf16>,
    %c3_i32 = arith.constant 3 : i32
    %c8_i32_31 = arith.constant 8 : i32
    %115 = arith.muli %c3_i32, %c8_i32_31 : i32
    %116 = tpu.assume_multiple %115, 8 : i32
    %117 = arith.index_cast %116 : i32 to index
    %c0_32 = arith.constant 0 : index
    %118 = vector.load %arg11[%117, %c0_32] : memref<64x128xf32, #tpu.memory_space<vmem>>, vector<8x128xf32>
    %119 = arith.truncf %111 : vector<8x32xf32> to vector<8x32xbf16>
    %cst_33 = arith.constant dense<0.000000e+00> : vector<8x128xf32>
    %120 = tpu.matmul %119, %1, %cst_33 {dimension_numbers = #tpu.dot_dimension_numbers<[1], [0], [0], [1], [0, 0, 1, 1], [], []>} : vector<8x32xbf16>, vector<32x128xbf16>, vector<8x128xf32> -> vector<8x128xf32>
    %121 = arith.addf %118, %120 : vector<8x128xf32>
    %122 = vector.extract_strided_slice %121 {offsets = [0, 0], sizes = [8, 32], strides = [1, 1]} : vector<8x128xf32> to vector<8x32xf32>
    %123 = arith.negf %122 : vector<8x32xf32>
    %124 = math.exp %123 : vector<8x32xf32>
    %cst_34 = arith.constant 1.000000e+00 : f32
    %125 = vector.broadcast %cst_34 : f32 to vector<8x32xf32>
    %126 = arith.addf %125, %124 : vector<8x32xf32>
    %127 = arith.divf %125, %126 : vector<8x32xf32>
    %128 = vector.extract_strided_slice %121 {offsets = [0, 32], sizes = [8, 32], strides = [1, 1]} : vector<8x128xf32> to vector<8x32xf32>
    %129 = arith.negf %128 : vector<8x32xf32>
    %130 = math.exp %129 : vector<8x32xf32>
    %cst_35 = arith.constant 1.000000e+00 : f32
    %131 = vector.broadcast %cst_35 : f32 to vector<8x32xf32>
    %132 = arith.addf %131, %130 : vector<8x32xf32>
    %133 = arith.divf %131, %132 : vector<8x32xf32>
    %134 = vector.extract_strided_slice %121 {offsets = [0, 64], sizes = [8, 32], strides = [1, 1]} : vector<8x128xf32> to vector<8x32xf32>
    %135 = math.tanh %134 : vector<8x32xf32>
    %136 = vector.extract_strided_slice %121 {offsets = [0, 96], sizes = [8, 32], strides = [1, 1]} : vector<8x128xf32> to vector<8x32xf32>
    %137 = arith.negf %136 : vector<8x32xf32>
    %138 = math.exp %137 : vector<8x32xf32>
    %cst_36 = arith.constant 1.000000e+00 : f32
    %139 = vector.broadcast %cst_36 : f32 to vector<8x32xf32>
    %140 = arith.addf %139, %138 : vector<8x32xf32>
    %141 = arith.divf %139, %140 : vector<8x32xf32>
    %142 = arith.mulf %133, %109 : vector<8x32xf32>
    %143 = arith.mulf %127, %135 : vector<8x32xf32>
    %144 = arith.addf %142, %143 : vector<8x32xf32>
    %145 = math.tanh %144 : vector<8x32xf32>
    %146 = arith.mulf %141, %145 : vector<8x32xf32>
    %147 = arith.truncf %146 : vector<8x32xf32> to vector<8x32xbf16>
    %148 = arith.index_cast %116 : i32 to index
    %c0_37 = arith.constant 0 : index
    %149 = vector.load %arg12[%148, %c0_37] : memref<64x32xbf16, #tpu.memory_space<vmem>>, vector<8x32xbf16>
    tpu.vector_store %arg12[%148, %c0_37], %147 {strides = array<i32>} : memref<64x32xbf16, #tpu.memory_space<vmem>>, vector<8x32xbf16>,
    %c4_i32 = arith.constant 4 : i32
    %c8_i32_38 = arith.constant 8 : i32
    %150 = arith.muli %c4_i32, %c8_i32_38 : i32
    %151 = tpu.assume_multiple %150, 8 : i32
    %152 = arith.index_cast %151 : i32 to index
    %c0_39 = arith.constant 0 : index
    %153 = vector.load %arg11[%152, %c0_39] : memref<64x128xf32, #tpu.memory_space<vmem>>, vector<8x128xf32>
    %154 = arith.truncf %146 : vector<8x32xf32> to vector<8x32xbf16>
    %cst_40 = arith.constant dense<0.000000e+00> : vector<8x128xf32>
    %155 = tpu.matmul %154, %1, %cst_40 {dimension_numbers = #tpu.dot_dimension_numbers<[1], [0], [0], [1], [0, 0, 1, 1], [], []>} : vector<8x32xbf16>, vector<32x128xbf16>, vector<8x128xf32> -> vector<8x128xf32>
    %156 = arith.addf %153, %155 : vector<8x128xf32>
    %157 = vector.extract_strided_slice %156 {offsets = [0, 0], sizes = [8, 32], strides = [1, 1]} : vector<8x128xf32> to vector<8x32xf32>
    %158 = arith.negf %157 : vector<8x32xf32>
    %159 = math.exp %158 : vector<8x32xf32>
    %cst_41 = arith.constant 1.000000e+00 : f32
    %160 = vector.broadcast %cst_41 : f32 to vector<8x32xf32>
    %161 = arith.addf %160, %159 : vector<8x32xf32>
    %162 = arith.divf %160, %161 : vector<8x32xf32>
    %163 = vector.extract_strided_slice %156 {offsets = [0, 32], sizes = [8, 32], strides = [1, 1]} : vector<8x128xf32> to vector<8x32xf32>
    %164 = arith.negf %163 : vector<8x32xf32>
    %165 = math.exp %164 : vector<8x32xf32>
    %cst_42 = arith.constant 1.000000e+00 : f32
    %166 = vector.broadcast %cst_42 : f32 to vector<8x32xf32>
    %167 = arith.addf %166, %165 : vector<8x32xf32>
    %168 = arith.divf %166, %167 : vector<8x32xf32>
    %169 = vector.extract_strided_slice %156 {offsets = [0, 64], sizes = [8, 32], strides = [1, 1]} : vector<8x128xf32> to vector<8x32xf32>
    %170 = math.tanh %169 : vector<8x32xf32>
    %171 = vector.extract_strided_slice %156 {offsets = [0, 96], sizes = [8, 32], strides = [1, 1]} : vector<8x128xf32> to vector<8x32xf32>
    %172 = arith.negf %171 : vector<8x32xf32>
    %173 = math.exp %172 : vector<8x32xf32>
    %cst_43 = arith.constant 1.000000e+00 : f32
    %174 = vector.broadcast %cst_43 : f32 to vector<8x32xf32>
    %175 = arith.addf %174, %173 : vector<8x32xf32>
    %176 = arith.divf %174, %175 : vector<8x32xf32>
    %177 = arith.mulf %168, %144 : vector<8x32xf32>
    %178 = arith.mulf %162, %170 : vector<8x32xf32>
    %179 = arith.addf %177, %178 : vector<8x32xf32>
    %180 = math.tanh %179 : vector<8x32xf32>
    %181 = arith.mulf %176, %180 : vector<8x32xf32>
    %182 = arith.truncf %181 : vector<8x32xf32> to vector<8x32xbf16>
    %183 = arith.index_cast %151 : i32 to index
    %c0_44 = arith.constant 0 : index
    %184 = vector.load %arg12[%183, %c0_44] : memref<64x32xbf16, #tpu.memory_space<vmem>>, vector<8x32xbf16>
    tpu.vector_store %arg12[%183, %c0_44], %182 {strides = array<i32>} : memref<64x32xbf16, #tpu.memory_space<vmem>>, vector<8x32xbf16>,
    %c5_i32 = arith.constant 5 : i32
    %c8_i32_45 = arith.constant 8 : i32
    %185 = arith.muli %c5_i32, %c8_i32_45 : i32
    %186 = tpu.assume_multiple %185, 8 : i32
    %187 = arith.index_cast %186 : i32 to index
    %c0_46 = arith.constant 0 : index
    %188 = vector.load %arg11[%187, %c0_46] : memref<64x128xf32, #tpu.memory_space<vmem>>, vector<8x128xf32>
    %189 = arith.truncf %181 : vector<8x32xf32> to vector<8x32xbf16>
    %cst_47 = arith.constant dense<0.000000e+00> : vector<8x128xf32>
    %190 = tpu.matmul %189, %1, %cst_47 {dimension_numbers = #tpu.dot_dimension_numbers<[1], [0], [0], [1], [0, 0, 1, 1], [], []>} : vector<8x32xbf16>, vector<32x128xbf16>, vector<8x128xf32> -> vector<8x128xf32>
    %191 = arith.addf %188, %190 : vector<8x128xf32>
    %192 = vector.extract_strided_slice %191 {offsets = [0, 0], sizes = [8, 32], strides = [1, 1]} : vector<8x128xf32> to vector<8x32xf32>
    %193 = arith.negf %192 : vector<8x32xf32>
    %194 = math.exp %193 : vector<8x32xf32>
    %cst_48 = arith.constant 1.000000e+00 : f32
    %195 = vector.broadcast %cst_48 : f32 to vector<8x32xf32>
    %196 = arith.addf %195, %194 : vector<8x32xf32>
    %197 = arith.divf %195, %196 : vector<8x32xf32>
    %198 = vector.extract_strided_slice %191 {offsets = [0, 32], sizes = [8, 32], strides = [1, 1]} : vector<8x128xf32> to vector<8x32xf32>
    %199 = arith.negf %198 : vector<8x32xf32>
    %200 = math.exp %199 : vector<8x32xf32>
    %cst_49 = arith.constant 1.000000e+00 : f32
    %201 = vector.broadcast %cst_49 : f32 to vector<8x32xf32>
    %202 = arith.addf %201, %200 : vector<8x32xf32>
    %203 = arith.divf %201, %202 : vector<8x32xf32>
    %204 = vector.extract_strided_slice %191 {offsets = [0, 64], sizes = [8, 32], strides = [1, 1]} : vector<8x128xf32> to vector<8x32xf32>
    %205 = math.tanh %204 : vector<8x32xf32>
    %206 = vector.extract_strided_slice %191 {offsets = [0, 96], sizes = [8, 32], strides = [1, 1]} : vector<8x128xf32> to vector<8x32xf32>
    %207 = arith.negf %206 : vector<8x32xf32>
    %208 = math.exp %207 : vector<8x32xf32>
    %cst_50 = arith.constant 1.000000e+00 : f32
    %209 = vector.broadcast %cst_50 : f32 to vector<8x32xf32>
    %210 = arith.addf %209, %208 : vector<8x32xf32>
    %211 = arith.divf %209, %210 : vector<8x32xf32>
    %212 = arith.mulf %203, %179 : vector<8x32xf32>
    %213 = arith.mulf %197, %205 : vector<8x32xf32>
    %214 = arith.addf %212, %213 : vector<8x32xf32>
    %215 = math.tanh %214 : vector<8x32xf32>
    %216 = arith.mulf %211, %215 : vector<8x32xf32>
    %217 = arith.truncf %216 : vector<8x32xf32> to vector<8x32xbf16>
    %218 = arith.index_cast %186 : i32 to index
    %c0_51 = arith.constant 0 : index
    %219 = vector.load %arg12[%218, %c0_51] : memref<64x32xbf16, #tpu.memory_space<vmem>>, vector<8x32xbf16>
    tpu.vector_store %arg12[%218, %c0_51], %217 {strides = array<i32>} : memref<64x32xbf16, #tpu.memory_space<vmem>>, vector<8x32xbf16>,
    %c6_i32 = arith.constant 6 : i32
    %c8_i32_52 = arith.constant 8 : i32
    %220 = arith.muli %c6_i32, %c8_i32_52 : i32
    %221 = tpu.assume_multiple %220, 8 : i32
    %222 = arith.index_cast %221 : i32 to index
    %c0_53 = arith.constant 0 : index
    %223 = vector.load %arg11[%222, %c0_53] : memref<64x128xf32, #tpu.memory_space<vmem>>, vector<8x128xf32>
    %224 = arith.truncf %216 : vector<8x32xf32> to vector<8x32xbf16>
    %cst_54 = arith.constant dense<0.000000e+00> : vector<8x128xf32>
    %225 = tpu.matmul %224, %1, %cst_54 {dimension_numbers = #tpu.dot_dimension_numbers<[1], [0], [0], [1], [0, 0, 1, 1], [], []>} : vector<8x32xbf16>, vector<32x128xbf16>, vector<8x128xf32> -> vector<8x128xf32>
    %226 = arith.addf %223, %225 : vector<8x128xf32>
    %227 = vector.extract_strided_slice %226 {offsets = [0, 0], sizes = [8, 32], strides = [1, 1]} : vector<8x128xf32> to vector<8x32xf32>
    %228 = arith.negf %227 : vector<8x32xf32>
    %229 = math.exp %228 : vector<8x32xf32>
    %cst_55 = arith.constant 1.000000e+00 : f32
    %230 = vector.broadcast %cst_55 : f32 to vector<8x32xf32>
    %231 = arith.addf %230, %229 : vector<8x32xf32>
    %232 = arith.divf %230, %231 : vector<8x32xf32>
    %233 = vector.extract_strided_slice %226 {offsets = [0, 32], sizes = [8, 32], strides = [1, 1]} : vector<8x128xf32> to vector<8x32xf32>
    %234 = arith.negf %233 : vector<8x32xf32>
    %235 = math.exp %234 : vector<8x32xf32>
    %cst_56 = arith.constant 1.000000e+00 : f32
    %236 = vector.broadcast %cst_56 : f32 to vector<8x32xf32>
    %237 = arith.addf %236, %235 : vector<8x32xf32>
    %238 = arith.divf %236, %237 : vector<8x32xf32>
    %239 = vector.extract_strided_slice %226 {offsets = [0, 64], sizes = [8, 32], strides = [1, 1]} : vector<8x128xf32> to vector<8x32xf32>
    %240 = math.tanh %239 : vector<8x32xf32>
    %241 = vector.extract_strided_slice %226 {offsets = [0, 96], sizes = [8, 32], strides = [1, 1]} : vector<8x128xf32> to vector<8x32xf32>
    %242 = arith.negf %241 : vector<8x32xf32>
    %243 = math.exp %242 : vector<8x32xf32>
    %cst_57 = arith.constant 1.000000e+00 : f32
    %244 = vector.broadcast %cst_57 : f32 to vector<8x32xf32>
    %245 = arith.addf %244, %243 : vector<8x32xf32>
    %246 = arith.divf %244, %245 : vector<8x32xf32>
    %247 = arith.mulf %238, %214 : vector<8x32xf32>
    %248 = arith.mulf %232, %240 : vector<8x32xf32>
    %249 = arith.addf %247, %248 : vector<8x32xf32>
    %250 = math.tanh %249 : vector<8x32xf32>
    %251 = arith.mulf %246, %250 : vector<8x32xf32>
    %252 = arith.truncf %251 : vector<8x32xf32> to vector<8x32xbf16>
    %253 = arith.index_cast %221 : i32 to index
    %c0_58 = arith.constant 0 : index
    %254 = vector.load %arg12[%253, %c0_58] : memref<64x32xbf16, #tpu.memory_space<vmem>>, vector<8x32xbf16>
    tpu.vector_store %arg12[%253, %c0_58], %252 {strides = array<i32>} : memref<64x32xbf16, #tpu.memory_space<vmem>>, vector<8x32xbf16>,
    %c7_i32 = arith.constant 7 : i32
    %c8_i32_59 = arith.constant 8 : i32
    %255 = arith.muli %c7_i32, %c8_i32_59 : i32
    %256 = tpu.assume_multiple %255, 8 : i32
    %257 = arith.index_cast %256 : i32 to index
    %c0_60 = arith.constant 0 : index
    %258 = vector.load %arg11[%257, %c0_60] : memref<64x128xf32, #tpu.memory_space<vmem>>, vector<8x128xf32>
    %259 = arith.truncf %251 : vector<8x32xf32> to vector<8x32xbf16>
    %cst_61 = arith.constant dense<0.000000e+00> : vector<8x128xf32>
    %260 = tpu.matmul %259, %1, %cst_61 {dimension_numbers = #tpu.dot_dimension_numbers<[1], [0], [0], [1], [0, 0, 1, 1], [], []>} : vector<8x32xbf16>, vector<32x128xbf16>, vector<8x128xf32> -> vector<8x128xf32>
    %261 = arith.addf %258, %260 : vector<8x128xf32>
    %262 = vector.extract_strided_slice %261 {offsets = [0, 0], sizes = [8, 32], strides = [1, 1]} : vector<8x128xf32> to vector<8x32xf32>
    %263 = arith.negf %262 : vector<8x32xf32>
    %264 = math.exp %263 : vector<8x32xf32>
    %cst_62 = arith.constant 1.000000e+00 : f32
    %265 = vector.broadcast %cst_62 : f32 to vector<8x32xf32>
    %266 = arith.addf %265, %264 : vector<8x32xf32>
    %267 = arith.divf %265, %266 : vector<8x32xf32>
    %268 = vector.extract_strided_slice %261 {offsets = [0, 32], sizes = [8, 32], strides = [1, 1]} : vector<8x128xf32> to vector<8x32xf32>
    %269 = arith.negf %268 : vector<8x32xf32>
    %270 = math.exp %269 : vector<8x32xf32>
    %cst_63 = arith.constant 1.000000e+00 : f32
    %271 = vector.broadcast %cst_63 : f32 to vector<8x32xf32>
    %272 = arith.addf %271, %270 : vector<8x32xf32>
    %273 = arith.divf %271, %272 : vector<8x32xf32>
    %274 = vector.extract_strided_slice %261 {offsets = [0, 64], sizes = [8, 32], strides = [1, 1]} : vector<8x128xf32> to vector<8x32xf32>
    %275 = math.tanh %274 : vector<8x32xf32>
    %276 = vector.extract_strided_slice %261 {offsets = [0, 96], sizes = [8, 32], strides = [1, 1]} : vector<8x128xf32> to vector<8x32xf32>
    %277 = arith.negf %276 : vector<8x32xf32>
    %278 = math.exp %277 : vector<8x32xf32>
    %cst_64 = arith.constant 1.000000e+00 : f32
    %279 = vector.broadcast %cst_64 : f32 to vector<8x32xf32>
    %280 = arith.addf %279, %278 : vector<8x32xf32>
    %281 = arith.divf %279, %280 : vector<8x32xf32>
    %282 = arith.mulf %273, %249 : vector<8x32xf32>
    %283 = arith.mulf %267, %275 : vector<8x32xf32>
    %284 = arith.addf %282, %283 : vector<8x32xf32>
    %285 = math.tanh %284 : vector<8x32xf32>
    %286 = arith.mulf %281, %285 : vector<8x32xf32>
    %287 = arith.truncf %286 : vector<8x32xf32> to vector<8x32xbf16>
    %288 = arith.index_cast %256 : i32 to index
    %c0_65 = arith.constant 0 : index
    %289 = vector.load %arg12[%288, %c0_65] : memref<64x32xbf16, #tpu.memory_space<vmem>>, vector<8x32xbf16>
    tpu.vector_store %arg12[%288, %c0_65], %287 {strides = array<i32>} : memref<64x32xbf16, #tpu.memory_space<vmem>>, vector<8x32xbf16>,
    %c8_i32_66 = arith.constant 8 : i32
    %c0_67 = arith.constant 0 : index
    %c0_68 = arith.constant 0 : index
    %290 = vector.load %arg5[%c0_67, %c0_68] : memref<32x128xbf16, #tpu.memory_space<vmem>>, vector<32x128xbf16>
    %c0_69 = arith.constant 0 : index
    %c0_70 = arith.constant 0 : index
    %291 = vector.load %arg6[%c0_69, %c0_70] : memref<32x128xbf16, #tpu.memory_space<vmem>>, vector<32x128xbf16>
    %c0_71 = arith.constant 0 : index
    %c0_72 = arith.constant 0 : index
    %292 = vector.load %arg7[%c0_71, %c0_72] : memref<1x128xf32, #tpu.memory_space<vmem>>, vector<1x128xf32>
    %c0_73 = arith.constant 0 : index
    %c0_74 = arith.constant 0 : index
    %293 = vector.load %arg12[%c0_73, %c0_74] : memref<64x32xbf16, #tpu.memory_space<vmem>>, vector<64x32xbf16>
    %cst_75 = arith.constant dense<0.000000e+00> : vector<64x128xf32>
    %294 = tpu.matmul %293, %290, %cst_75 {dimension_numbers = #tpu.dot_dimension_numbers<[1], [0], [0], [1], [0, 0, 1, 1], [], []>} : vector<64x32xbf16>, vector<32x128xbf16>, vector<64x128xf32> -> vector<64x128xf32>
    %295 = vector.broadcast %292 : vector<1x128xf32> to vector<64x128xf32>
    %296 = arith.addf %294, %295 : vector<64x128xf32>
    %c0_76 = arith.constant 0 : index
    %c0_77 = arith.constant 0 : index
    %297 = vector.load %arg11[%c0_76, %c0_77] : memref<64x128xf32, #tpu.memory_space<vmem>>, vector<64x128xf32>
    tpu.vector_store %arg11[%c0_76, %c0_77], %296 {strides = array<i32>} : memref<64x128xf32, #tpu.memory_space<vmem>>, vector<64x128xf32>,
    %cst_78 = arith.constant 0.000000e+00 : f32
    %298 = vector.broadcast %cst_78 : f32 to vector<8x32xf32>
    %cst_79 = arith.constant 0.000000e+00 : f32
    %299 = vector.broadcast %cst_79 : f32 to vector<8x32xf32>
    %c0_i32_80 = arith.constant 0 : i32
    %c8_i32_81 = arith.constant 8 : i32
    %300 = arith.muli %c0_i32_80, %c8_i32_81 : i32
    %301 = tpu.assume_multiple %300, 8 : i32
    %302 = arith.index_cast %301 : i32 to index
    %c0_82 = arith.constant 0 : index
    %303 = vector.load %arg11[%302, %c0_82] : memref<64x128xf32, #tpu.memory_space<vmem>>, vector<8x128xf32>
    %304 = arith.truncf %298 : vector<8x32xf32> to vector<8x32xbf16>
    %cst_83 = arith.constant dense<0.000000e+00> : vector<8x128xf32>
    %305 = tpu.matmul %304, %291, %cst_83 {dimension_numbers = #tpu.dot_dimension_numbers<[1], [0], [0], [1], [0, 0, 1, 1], [], []>} : vector<8x32xbf16>, vector<32x128xbf16>, vector<8x128xf32> -> vector<8x128xf32>
    %306 = arith.addf %303, %305 : vector<8x128xf32>
    %307 = vector.extract_strided_slice %306 {offsets = [0, 0], sizes = [8, 32], strides = [1, 1]} : vector<8x128xf32> to vector<8x32xf32>
    %308 = arith.negf %307 : vector<8x32xf32>
    %309 = math.exp %308 : vector<8x32xf32>
    %cst_84 = arith.constant 1.000000e+00 : f32
    %310 = vector.broadcast %cst_84 : f32 to vector<8x32xf32>
    %311 = arith.addf %310, %309 : vector<8x32xf32>
    %312 = arith.divf %310, %311 : vector<8x32xf32>
    %313 = vector.extract_strided_slice %306 {offsets = [0, 32], sizes = [8, 32], strides = [1, 1]} : vector<8x128xf32> to vector<8x32xf32>
    %314 = arith.negf %313 : vector<8x32xf32>
    %315 = math.exp %314 : vector<8x32xf32>
    %cst_85 = arith.constant 1.000000e+00 : f32
    %316 = vector.broadcast %cst_85 : f32 to vector<8x32xf32>
    %317 = arith.addf %316, %315 : vector<8x32xf32>
    %318 = arith.divf %316, %317 : vector<8x32xf32>
    %319 = vector.extract_strided_slice %306 {offsets = [0, 64], sizes = [8, 32], strides = [1, 1]} : vector<8x128xf32> to vector<8x32xf32>
    %320 = math.tanh %319 : vector<8x32xf32>
    %321 = vector.extract_strided_slice %306 {offsets = [0, 96], sizes = [8, 32], strides = [1, 1]} : vector<8x128xf32> to vector<8x32xf32>
    %322 = arith.negf %321 : vector<8x32xf32>
    %323 = math.exp %322 : vector<8x32xf32>
    %cst_86 = arith.constant 1.000000e+00 : f32
    %324 = vector.broadcast %cst_86 : f32 to vector<8x32xf32>
    %325 = arith.addf %324, %323 : vector<8x32xf32>
    %326 = arith.divf %324, %325 : vector<8x32xf32>
    %327 = arith.mulf %318, %299 : vector<8x32xf32>
    %328 = arith.mulf %312, %320 : vector<8x32xf32>
    %329 = arith.addf %327, %328 : vector<8x32xf32>
    %330 = math.tanh %329 : vector<8x32xf32>
    %331 = arith.mulf %326, %330 : vector<8x32xf32>
    %c1_i32_87 = arith.constant 1 : i32
    %c8_i32_88 = arith.constant 8 : i32
    %332 = arith.muli %c1_i32_87, %c8_i32_88 : i32
    %333 = tpu.assume_multiple %332, 8 : i32
    %334 = arith.index_cast %333 : i32 to index
    %c0_89 = arith.constant 0 : index
    %335 = vector.load %arg11[%334, %c0_89] : memref<64x128xf32, #tpu.memory_space<vmem>>, vector<8x128xf32>
    %336 = arith.truncf %331 : vector<8x32xf32> to vector<8x32xbf16>
    %cst_90 = arith.constant dense<0.000000e+00> : vector<8x128xf32>
    %337 = tpu.matmul %336, %291, %cst_90 {dimension_numbers = #tpu.dot_dimension_numbers<[1], [0], [0], [1], [0, 0, 1, 1], [], []>} : vector<8x32xbf16>, vector<32x128xbf16>, vector<8x128xf32> -> vector<8x128xf32>
    %338 = arith.addf %335, %337 : vector<8x128xf32>
    %339 = vector.extract_strided_slice %338 {offsets = [0, 0], sizes = [8, 32], strides = [1, 1]} : vector<8x128xf32> to vector<8x32xf32>
    %340 = arith.negf %339 : vector<8x32xf32>
    %341 = math.exp %340 : vector<8x32xf32>
    %cst_91 = arith.constant 1.000000e+00 : f32
    %342 = vector.broadcast %cst_91 : f32 to vector<8x32xf32>
    %343 = arith.addf %342, %341 : vector<8x32xf32>
    %344 = arith.divf %342, %343 : vector<8x32xf32>
    %345 = vector.extract_strided_slice %338 {offsets = [0, 32], sizes = [8, 32], strides = [1, 1]} : vector<8x128xf32> to vector<8x32xf32>
    %346 = arith.negf %345 : vector<8x32xf32>
    %347 = math.exp %346 : vector<8x32xf32>
    %cst_92 = arith.constant 1.000000e+00 : f32
    %348 = vector.broadcast %cst_92 : f32 to vector<8x32xf32>
    %349 = arith.addf %348, %347 : vector<8x32xf32>
    %350 = arith.divf %348, %349 : vector<8x32xf32>
    %351 = vector.extract_strided_slice %338 {offsets = [0, 64], sizes = [8, 32], strides = [1, 1]} : vector<8x128xf32> to vector<8x32xf32>
    %352 = math.tanh %351 : vector<8x32xf32>
    %353 = vector.extract_strided_slice %338 {offsets = [0, 96], sizes = [8, 32], strides = [1, 1]} : vector<8x128xf32> to vector<8x32xf32>
    %354 = arith.negf %353 : vector<8x32xf32>
    %355 = math.exp %354 : vector<8x32xf32>
    %cst_93 = arith.constant 1.000000e+00 : f32
    %356 = vector.broadcast %cst_93 : f32 to vector<8x32xf32>
    %357 = arith.addf %356, %355 : vector<8x32xf32>
    %358 = arith.divf %356, %357 : vector<8x32xf32>
    %359 = arith.mulf %350, %329 : vector<8x32xf32>
    %360 = arith.mulf %344, %352 : vector<8x32xf32>
    %361 = arith.addf %359, %360 : vector<8x32xf32>
    %362 = math.tanh %361 : vector<8x32xf32>
    %363 = arith.mulf %358, %362 : vector<8x32xf32>
    %c2_i32_94 = arith.constant 2 : i32
    %c8_i32_95 = arith.constant 8 : i32
    %364 = arith.muli %c2_i32_94, %c8_i32_95 : i32
    %365 = tpu.assume_multiple %364, 8 : i32
    %366 = arith.index_cast %365 : i32 to index
    %c0_96 = arith.constant 0 : index
    %367 = vector.load %arg11[%366, %c0_96] : memref<64x128xf32, #tpu.memory_space<vmem>>, vector<8x128xf32>
    %368 = arith.truncf %363 : vector<8x32xf32> to vector<8x32xbf16>
    %cst_97 = arith.constant dense<0.000000e+00> : vector<8x128xf32>
    %369 = tpu.matmul %368, %291, %cst_97 {dimension_numbers = #tpu.dot_dimension_numbers<[1], [0], [0], [1], [0, 0, 1, 1], [], []>} : vector<8x32xbf16>, vector<32x128xbf16>, vector<8x128xf32> -> vector<8x128xf32>
    %370 = arith.addf %367, %369 : vector<8x128xf32>
    %371 = vector.extract_strided_slice %370 {offsets = [0, 0], sizes = [8, 32], strides = [1, 1]} : vector<8x128xf32> to vector<8x32xf32>
    %372 = arith.negf %371 : vector<8x32xf32>
    %373 = math.exp %372 : vector<8x32xf32>
    %cst_98 = arith.constant 1.000000e+00 : f32
    %374 = vector.broadcast %cst_98 : f32 to vector<8x32xf32>
    %375 = arith.addf %374, %373 : vector<8x32xf32>
    %376 = arith.divf %374, %375 : vector<8x32xf32>
    %377 = vector.extract_strided_slice %370 {offsets = [0, 32], sizes = [8, 32], strides = [1, 1]} : vector<8x128xf32> to vector<8x32xf32>
    %378 = arith.negf %377 : vector<8x32xf32>
    %379 = math.exp %378 : vector<8x32xf32>
    %cst_99 = arith.constant 1.000000e+00 : f32
    %380 = vector.broadcast %cst_99 : f32 to vector<8x32xf32>
    %381 = arith.addf %380, %379 : vector<8x32xf32>
    %382 = arith.divf %380, %381 : vector<8x32xf32>
    %383 = vector.extract_strided_slice %370 {offsets = [0, 64], sizes = [8, 32], strides = [1, 1]} : vector<8x128xf32> to vector<8x32xf32>
    %384 = math.tanh %383 : vector<8x32xf32>
    %385 = vector.extract_strided_slice %370 {offsets = [0, 96], sizes = [8, 32], strides = [1, 1]} : vector<8x128xf32> to vector<8x32xf32>
    %386 = arith.negf %385 : vector<8x32xf32>
    %387 = math.exp %386 : vector<8x32xf32>
    %cst_100 = arith.constant 1.000000e+00 : f32
    %388 = vector.broadcast %cst_100 : f32 to vector<8x32xf32>
    %389 = arith.addf %388, %387 : vector<8x32xf32>
    %390 = arith.divf %388, %389 : vector<8x32xf32>
    %391 = arith.mulf %382, %361 : vector<8x32xf32>
    %392 = arith.mulf %376, %384 : vector<8x32xf32>
    %393 = arith.addf %391, %392 : vector<8x32xf32>
    %394 = math.tanh %393 : vector<8x32xf32>
    %395 = arith.mulf %390, %394 : vector<8x32xf32>
    %c3_i32_101 = arith.constant 3 : i32
    %c8_i32_102 = arith.constant 8 : i32
    %396 = arith.muli %c3_i32_101, %c8_i32_102 : i32
    %397 = tpu.assume_multiple %396, 8 : i32
    %398 = arith.index_cast %397 : i32 to index
    %c0_103 = arith.constant 0 : index
    %399 = vector.load %arg11[%398, %c0_103] : memref<64x128xf32, #tpu.memory_space<vmem>>, vector<8x128xf32>
    %400 = arith.truncf %395 : vector<8x32xf32> to vector<8x32xbf16>
    %cst_104 = arith.constant dense<0.000000e+00> : vector<8x128xf32>
    %401 = tpu.matmul %400, %291, %cst_104 {dimension_numbers = #tpu.dot_dimension_numbers<[1], [0], [0], [1], [0, 0, 1, 1], [], []>} : vector<8x32xbf16>, vector<32x128xbf16>, vector<8x128xf32> -> vector<8x128xf32>
    %402 = arith.addf %399, %401 : vector<8x128xf32>
    %403 = vector.extract_strided_slice %402 {offsets = [0, 0], sizes = [8, 32], strides = [1, 1]} : vector<8x128xf32> to vector<8x32xf32>
    %404 = arith.negf %403 : vector<8x32xf32>
    %405 = math.exp %404 : vector<8x32xf32>
    %cst_105 = arith.constant 1.000000e+00 : f32
    %406 = vector.broadcast %cst_105 : f32 to vector<8x32xf32>
    %407 = arith.addf %406, %405 : vector<8x32xf32>
    %408 = arith.divf %406, %407 : vector<8x32xf32>
    %409 = vector.extract_strided_slice %402 {offsets = [0, 32], sizes = [8, 32], strides = [1, 1]} : vector<8x128xf32> to vector<8x32xf32>
    %410 = arith.negf %409 : vector<8x32xf32>
    %411 = math.exp %410 : vector<8x32xf32>
    %cst_106 = arith.constant 1.000000e+00 : f32
    %412 = vector.broadcast %cst_106 : f32 to vector<8x32xf32>
    %413 = arith.addf %412, %411 : vector<8x32xf32>
    %414 = arith.divf %412, %413 : vector<8x32xf32>
    %415 = vector.extract_strided_slice %402 {offsets = [0, 64], sizes = [8, 32], strides = [1, 1]} : vector<8x128xf32> to vector<8x32xf32>
    %416 = math.tanh %415 : vector<8x32xf32>
    %417 = vector.extract_strided_slice %402 {offsets = [0, 96], sizes = [8, 32], strides = [1, 1]} : vector<8x128xf32> to vector<8x32xf32>
    %418 = arith.negf %417 : vector<8x32xf32>
    %419 = math.exp %418 : vector<8x32xf32>
    %cst_107 = arith.constant 1.000000e+00 : f32
    %420 = vector.broadcast %cst_107 : f32 to vector<8x32xf32>
    %421 = arith.addf %420, %419 : vector<8x32xf32>
    %422 = arith.divf %420, %421 : vector<8x32xf32>
    %423 = arith.mulf %414, %393 : vector<8x32xf32>
    %424 = arith.mulf %408, %416 : vector<8x32xf32>
    %425 = arith.addf %423, %424 : vector<8x32xf32>
    %426 = math.tanh %425 : vector<8x32xf32>
    %427 = arith.mulf %422, %426 : vector<8x32xf32>
    %c4_i32_108 = arith.constant 4 : i32
    %c8_i32_109 = arith.constant 8 : i32
    %428 = arith.muli %c4_i32_108, %c8_i32_109 : i32
    %429 = tpu.assume_multiple %428, 8 : i32
    %430 = arith.index_cast %429 : i32 to index
    %c0_110 = arith.constant 0 : index
    %431 = vector.load %arg11[%430, %c0_110] : memref<64x128xf32, #tpu.memory_space<vmem>>, vector<8x128xf32>
    %432 = arith.truncf %427 : vector<8x32xf32> to vector<8x32xbf16>
    %cst_111 = arith.constant dense<0.000000e+00> : vector<8x128xf32>
    %433 = tpu.matmul %432, %291, %cst_111 {dimension_numbers = #tpu.dot_dimension_numbers<[1], [0], [0], [1], [0, 0, 1, 1], [], []>} : vector<8x32xbf16>, vector<32x128xbf16>, vector<8x128xf32> -> vector<8x128xf32>
    %434 = arith.addf %431, %433 : vector<8x128xf32>
    %435 = vector.extract_strided_slice %434 {offsets = [0, 0], sizes = [8, 32], strides = [1, 1]} : vector<8x128xf32> to vector<8x32xf32>
    %436 = arith.negf %435 : vector<8x32xf32>
    %437 = math.exp %436 : vector<8x32xf32>
    %cst_112 = arith.constant 1.000000e+00 : f32
    %438 = vector.broadcast %cst_112 : f32 to vector<8x32xf32>
    %439 = arith.addf %438, %437 : vector<8x32xf32>
    %440 = arith.divf %438, %439 : vector<8x32xf32>
    %441 = vector.extract_strided_slice %434 {offsets = [0, 32], sizes = [8, 32], strides = [1, 1]} : vector<8x128xf32> to vector<8x32xf32>
    %442 = arith.negf %441 : vector<8x32xf32>
    %443 = math.exp %442 : vector<8x32xf32>
    %cst_113 = arith.constant 1.000000e+00 : f32
    %444 = vector.broadcast %cst_113 : f32 to vector<8x32xf32>
    %445 = arith.addf %444, %443 : vector<8x32xf32>
    %446 = arith.divf %444, %445 : vector<8x32xf32>
    %447 = vector.extract_strided_slice %434 {offsets = [0, 64], sizes = [8, 32], strides = [1, 1]} : vector<8x128xf32> to vector<8x32xf32>
    %448 = math.tanh %447 : vector<8x32xf32>
    %449 = vector.extract_strided_slice %434 {offsets = [0, 96], sizes = [8, 32], strides = [1, 1]} : vector<8x128xf32> to vector<8x32xf32>
    %450 = arith.negf %449 : vector<8x32xf32>
    %451 = math.exp %450 : vector<8x32xf32>
    %cst_114 = arith.constant 1.000000e+00 : f32
    %452 = vector.broadcast %cst_114 : f32 to vector<8x32xf32>
    %453 = arith.addf %452, %451 : vector<8x32xf32>
    %454 = arith.divf %452, %453 : vector<8x32xf32>
    %455 = arith.mulf %446, %425 : vector<8x32xf32>
    %456 = arith.mulf %440, %448 : vector<8x32xf32>
    %457 = arith.addf %455, %456 : vector<8x32xf32>
    %458 = math.tanh %457 : vector<8x32xf32>
    %459 = arith.mulf %454, %458 : vector<8x32xf32>
    %c5_i32_115 = arith.constant 5 : i32
    %c8_i32_116 = arith.constant 8 : i32
    %460 = arith.muli %c5_i32_115, %c8_i32_116 : i32
    %461 = tpu.assume_multiple %460, 8 : i32
    %462 = arith.index_cast %461 : i32 to index
    %c0_117 = arith.constant 0 : index
    %463 = vector.load %arg11[%462, %c0_117] : memref<64x128xf32, #tpu.memory_space<vmem>>, vector<8x128xf32>
    %464 = arith.truncf %459 : vector<8x32xf32> to vector<8x32xbf16>
    %cst_118 = arith.constant dense<0.000000e+00> : vector<8x128xf32>
    %465 = tpu.matmul %464, %291, %cst_118 {dimension_numbers = #tpu.dot_dimension_numbers<[1], [0], [0], [1], [0, 0, 1, 1], [], []>} : vector<8x32xbf16>, vector<32x128xbf16>, vector<8x128xf32> -> vector<8x128xf32>
    %466 = arith.addf %463, %465 : vector<8x128xf32>
    %467 = vector.extract_strided_slice %466 {offsets = [0, 0], sizes = [8, 32], strides = [1, 1]} : vector<8x128xf32> to vector<8x32xf32>
    %468 = arith.negf %467 : vector<8x32xf32>
    %469 = math.exp %468 : vector<8x32xf32>
    %cst_119 = arith.constant 1.000000e+00 : f32
    %470 = vector.broadcast %cst_119 : f32 to vector<8x32xf32>
    %471 = arith.addf %470, %469 : vector<8x32xf32>
    %472 = arith.divf %470, %471 : vector<8x32xf32>
    %473 = vector.extract_strided_slice %466 {offsets = [0, 32], sizes = [8, 32], strides = [1, 1]} : vector<8x128xf32> to vector<8x32xf32>
    %474 = arith.negf %473 : vector<8x32xf32>
    %475 = math.exp %474 : vector<8x32xf32>
    %cst_120 = arith.constant 1.000000e+00 : f32
    %476 = vector.broadcast %cst_120 : f32 to vector<8x32xf32>
    %477 = arith.addf %476, %475 : vector<8x32xf32>
    %478 = arith.divf %476, %477 : vector<8x32xf32>
    %479 = vector.extract_strided_slice %466 {offsets = [0, 64], sizes = [8, 32], strides = [1, 1]} : vector<8x128xf32> to vector<8x32xf32>
    %480 = math.tanh %479 : vector<8x32xf32>
    %481 = vector.extract_strided_slice %466 {offsets = [0, 96], sizes = [8, 32], strides = [1, 1]} : vector<8x128xf32> to vector<8x32xf32>
    %482 = arith.negf %481 : vector<8x32xf32>
    %483 = math.exp %482 : vector<8x32xf32>
    %cst_121 = arith.constant 1.000000e+00 : f32
    %484 = vector.broadcast %cst_121 : f32 to vector<8x32xf32>
    %485 = arith.addf %484, %483 : vector<8x32xf32>
    %486 = arith.divf %484, %485 : vector<8x32xf32>
    %487 = arith.mulf %478, %457 : vector<8x32xf32>
    %488 = arith.mulf %472, %480 : vector<8x32xf32>
    %489 = arith.addf %487, %488 : vector<8x32xf32>
    %490 = math.tanh %489 : vector<8x32xf32>
    %491 = arith.mulf %486, %490 : vector<8x32xf32>
    %c6_i32_122 = arith.constant 6 : i32
    %c8_i32_123 = arith.constant 8 : i32
    %492 = arith.muli %c6_i32_122, %c8_i32_123 : i32
    %493 = tpu.assume_multiple %492, 8 : i32
    %494 = arith.index_cast %493 : i32 to index
    %c0_124 = arith.constant 0 : index
    %495 = vector.load %arg11[%494, %c0_124] : memref<64x128xf32, #tpu.memory_space<vmem>>, vector<8x128xf32>
    %496 = arith.truncf %491 : vector<8x32xf32> to vector<8x32xbf16>
    %cst_125 = arith.constant dense<0.000000e+00> : vector<8x128xf32>
    %497 = tpu.matmul %496, %291, %cst_125 {dimension_numbers = #tpu.dot_dimension_numbers<[1], [0], [0], [1], [0, 0, 1, 1], [], []>} : vector<8x32xbf16>, vector<32x128xbf16>, vector<8x128xf32> -> vector<8x128xf32>
    %498 = arith.addf %495, %497 : vector<8x128xf32>
    %499 = vector.extract_strided_slice %498 {offsets = [0, 0], sizes = [8, 32], strides = [1, 1]} : vector<8x128xf32> to vector<8x32xf32>
    %500 = arith.negf %499 : vector<8x32xf32>
    %501 = math.exp %500 : vector<8x32xf32>
    %cst_126 = arith.constant 1.000000e+00 : f32
    %502 = vector.broadcast %cst_126 : f32 to vector<8x32xf32>
    %503 = arith.addf %502, %501 : vector<8x32xf32>
    %504 = arith.divf %502, %503 : vector<8x32xf32>
    %505 = vector.extract_strided_slice %498 {offsets = [0, 32], sizes = [8, 32], strides = [1, 1]} : vector<8x128xf32> to vector<8x32xf32>
    %506 = arith.negf %505 : vector<8x32xf32>
    %507 = math.exp %506 : vector<8x32xf32>
    %cst_127 = arith.constant 1.000000e+00 : f32
    %508 = vector.broadcast %cst_127 : f32 to vector<8x32xf32>
    %509 = arith.addf %508, %507 : vector<8x32xf32>
    %510 = arith.divf %508, %509 : vector<8x32xf32>
    %511 = vector.extract_strided_slice %498 {offsets = [0, 64], sizes = [8, 32], strides = [1, 1]} : vector<8x128xf32> to vector<8x32xf32>
    %512 = math.tanh %511 : vector<8x32xf32>
    %513 = vector.extract_strided_slice %498 {offsets = [0, 96], sizes = [8, 32], strides = [1, 1]} : vector<8x128xf32> to vector<8x32xf32>
    %514 = arith.negf %513 : vector<8x32xf32>
    %515 = math.exp %514 : vector<8x32xf32>
    %cst_128 = arith.constant 1.000000e+00 : f32
    %516 = vector.broadcast %cst_128 : f32 to vector<8x32xf32>
    %517 = arith.addf %516, %515 : vector<8x32xf32>
    %518 = arith.divf %516, %517 : vector<8x32xf32>
    %519 = arith.mulf %510, %489 : vector<8x32xf32>
    %520 = arith.mulf %504, %512 : vector<8x32xf32>
    %521 = arith.addf %519, %520 : vector<8x32xf32>
    %522 = math.tanh %521 : vector<8x32xf32>
    %523 = arith.mulf %518, %522 : vector<8x32xf32>
    %c7_i32_129 = arith.constant 7 : i32
    %c8_i32_130 = arith.constant 8 : i32
    %524 = arith.muli %c7_i32_129, %c8_i32_130 : i32
    %525 = tpu.assume_multiple %524, 8 : i32
    %526 = arith.index_cast %525 : i32 to index
    %c0_131 = arith.constant 0 : index
    %527 = vector.load %arg11[%526, %c0_131] : memref<64x128xf32, #tpu.memory_space<vmem>>, vector<8x128xf32>
    %528 = arith.truncf %523 : vector<8x32xf32> to vector<8x32xbf16>
    %cst_132 = arith.constant dense<0.000000e+00> : vector<8x128xf32>
    %529 = tpu.matmul %528, %291, %cst_132 {dimension_numbers = #tpu.dot_dimension_numbers<[1], [0], [0], [1], [0, 0, 1, 1], [], []>} : vector<8x32xbf16>, vector<32x128xbf16>, vector<8x128xf32> -> vector<8x128xf32>
    %530 = arith.addf %527, %529 : vector<8x128xf32>
    %531 = vector.extract_strided_slice %530 {offsets = [0, 0], sizes = [8, 32], strides = [1, 1]} : vector<8x128xf32> to vector<8x32xf32>
    %532 = arith.negf %531 : vector<8x32xf32>
    %533 = math.exp %532 : vector<8x32xf32>
    %cst_133 = arith.constant 1.000000e+00 : f32
    %534 = vector.broadcast %cst_133 : f32 to vector<8x32xf32>
    %535 = arith.addf %534, %533 : vector<8x32xf32>
    %536 = arith.divf %534, %535 : vector<8x32xf32>
    %537 = vector.extract_strided_slice %530 {offsets = [0, 32], sizes = [8, 32], strides = [1, 1]} : vector<8x128xf32> to vector<8x32xf32>
    %538 = arith.negf %537 : vector<8x32xf32>
    %539 = math.exp %538 : vector<8x32xf32>
    %cst_134 = arith.constant 1.000000e+00 : f32
    %540 = vector.broadcast %cst_134 : f32 to vector<8x32xf32>
    %541 = arith.addf %540, %539 : vector<8x32xf32>
    %542 = arith.divf %540, %541 : vector<8x32xf32>
    %543 = vector.extract_strided_slice %530 {offsets = [0, 64], sizes = [8, 32], strides = [1, 1]} : vector<8x128xf32> to vector<8x32xf32>
    %544 = math.tanh %543 : vector<8x32xf32>
    %545 = vector.extract_strided_slice %530 {offsets = [0, 96], sizes = [8, 32], strides = [1, 1]} : vector<8x128xf32> to vector<8x32xf32>
    %546 = arith.negf %545 : vector<8x32xf32>
    %547 = math.exp %546 : vector<8x32xf32>
    %cst_135 = arith.constant 1.000000e+00 : f32
    %548 = vector.broadcast %cst_135 : f32 to vector<8x32xf32>
    %549 = arith.addf %548, %547 : vector<8x32xf32>
    %550 = arith.divf %548, %549 : vector<8x32xf32>
    %551 = arith.mulf %542, %521 : vector<8x32xf32>
    %552 = arith.mulf %536, %544 : vector<8x32xf32>
    %553 = arith.addf %551, %552 : vector<8x32xf32>
    %554 = math.tanh %553 : vector<8x32xf32>
    %555 = arith.mulf %550, %554 : vector<8x32xf32>
    %c8_i32_136 = arith.constant 8 : i32
    %c0_137 = arith.constant 0 : index
    %c0_138 = arith.constant 0 : index
    %556 = vector.load %arg8[%c0_137, %c0_138] : memref<1x32xf32, #tpu.memory_space<vmem>>, vector<1x32xf32>
    %557 = vector.broadcast %556 : vector<1x32xf32> to vector<8x32xf32>
    %558 = arith.mulf %555, %557 : vector<8x32xf32>
    %cst_139 = arith.constant dense<0.000000e+00> : vector<8xf32>
    %559 = vector.multi_reduction <add>, %558, %cst_139 [1] : vector<8x32xf32> to vector<8xf32>
    %560 = vector.shape_cast %559 : vector<8xf32> to vector<8x1xf32>
    %c0_140 = arith.constant 0 : index
    %c0_141 = arith.constant 0 : index
    %561 = vector.load %arg9[%c0_140, %c0_141] : memref<1x1xf32, #tpu.memory_space<vmem>>, vector<1x1xf32>
    %562 = vector.broadcast %561 : vector<1x1xf32> to vector<8x1xf32>
    %563 = arith.addf %560, %562 : vector<8x1xf32>
    %564 = arith.negf %563 : vector<8x1xf32>
    %565 = math.exp %564 : vector<8x1xf32>
    %cst_142 = arith.constant 1.000000e+00 : f32
    %566 = vector.broadcast %cst_142 : f32 to vector<8x1xf32>
    %567 = arith.addf %566, %565 : vector<8x1xf32>
    %568 = arith.divf %566, %567 : vector<8x1xf32>
    %569 = vector.shape_cast %568 : vector<8x1xf32> to vector<8x1xf32>
    %570 = vector.broadcast %569 : vector<8x1xf32> to vector<8x128xf32>
    %c0_143 = arith.constant 0 : index
    %c0_144 = arith.constant 0 : index
    %571 = vector.load %arg10[%c0_143, %c0_144] : memref<8x128xf32, #tpu.memory_space<vmem>>, vector<8x128xf32>
    tpu.vector_store %arg10[%c0_143, %c0_144], %570 {strides = array<i32>} : memref<8x128xf32, #tpu.memory_space<vmem>>, vector<8x128xf32>,
    return
  }
  func.func @transform_0(%arg0: i32) -> (i32, i32) {
    %c0_i32 = arith.constant 0 : i32
    %c0_i32_0 = arith.constant 0 : i32
    %c0_i32_1 = arith.constant 0 : i32
    return %c0_i32, %c0_i32_0 : i32, i32
  }
  func.func @transform_1(%arg0: i32) -> (i32, i32) {
    %c0_i32 = arith.constant 0 : i32
    %c0_i32_0 = arith.constant 0 : i32
    %c0_i32_1 = arith.constant 0 : i32
    return %c0_i32, %c0_i32_0 : i32, i32
  }
  func.func @transform_2(%arg0: i32) -> (i32, i32) {
    %c0_i32 = arith.constant 0 : i32
    %c0_i32_0 = arith.constant 0 : i32
    %c0_i32_1 = arith.constant 0 : i32
    return %c0_i32, %c0_i32_0 : i32, i32
  }
  func.func @transform_3(%arg0: i32) -> (i32, i32) {
    %c0_i32 = arith.constant 0 : i32
    %c0_i32_0 = arith.constant 0 : i32
    %c0_i32_1 = arith.constant 0 : i32
    return %c0_i32, %c0_i32_0 : i32, i32
  }
  func.func @transform_4(%arg0: i32) -> (i32, i32) {
    %c0_i32 = arith.constant 0 : i32
    %c0_i32_0 = arith.constant 0 : i32
    %c0_i32_1 = arith.constant 0 : i32
    return %c0_i32, %c0_i32_0 : i32, i32
  }
  func.func @transform_5(%arg0: i32) -> (i32, i32) {
    %c0_i32 = arith.constant 0 : i32
    %c0_i32_0 = arith.constant 0 : i32
    %c0_i32_1 = arith.constant 0 : i32
    return %c0_i32, %c0_i32_0 : i32, i32
  }
  func.func @transform_6(%arg0: i32) -> (i32, i32) {
    %c0_i32 = arith.constant 0 : i32
    %c0_i32_0 = arith.constant 0 : i32
    %c0_i32_1 = arith.constant 0 : i32
    return %c0_i32, %c0_i32_0 : i32, i32
  }
  func.func @transform_7(%arg0: i32) -> (i32, i32) {
    %c0_i32 = arith.constant 0 : i32
    %c0_i32_0 = arith.constant 0 : i32
    %c0_i32_1 = arith.constant 0 : i32
    return %c0_i32, %c0_i32_0 : i32, i32
  }
  func.func @transform_8(%arg0: i32) -> (i32, i32) {
    %c0_i32 = arith.constant 0 : i32
    %c0_i32_0 = arith.constant 0 : i32
    %c0_i32_1 = arith.constant 0 : i32
    return %c0_i32, %c0_i32_0 : i32, i32
  }
  func.func @transform_9(%arg0: i32) -> (i32, i32) {
    %c0_i32 = arith.constant 0 : i32
    %c0_i32_0 = arith.constant 0 : i32
    %c0_i32_1 = arith.constant 0 : i32
    return %c0_i32, %c0_i32_0 : i32, i32
  }
}

</mosaic_0001>

<bundles_post_ra>
// kernel: tpu_custom_call.1
= control target key start
LH: loop header
LB: loop body
LE: loop exit
PB: predicated region body
PF: predicated region fallthrough
CT: control target
= control target key end

     0   :  { %s2514_s0 = inlined_call_operand.vmem [shape: bf16[64,16], index: 0, kind: input, shape index: {}]   ;;  %s2515_s1 = inlined_call_operand.hbm [shape: bf16[16,128], index: 1, kind: input, shape index: {}]   ;;  %s2516_s2 = inlined_call_operand.vmem [shape: bf16[32,128], index: 2, kind: input, shape index: {}]   ;;  %s2517_s3 = inlined_call_operand.vmem [shape: f32[1,128], index: 3, kind: input, shape index: {}]   ;;  %s2518_s4 = inlined_call_operand.vmem [shape: bf16[32,128], index: 4, kind: input, shape index: {}]   ;;  %s2519_s5 = inlined_call_operand.vmem [shape: bf16[32,128], index: 5, kind: input, shape index: {}]   ;;  %s2520_s6 = inlined_call_operand.vmem [shape: f32[1,128], index: 6, kind: input, shape index: {}]   ;;  %s2521_s7 = inlined_call_operand.vmem [shape: f32[1,32], index: 7, kind: input, shape index: {}]   ;;  %s2522_s8 = inlined_call_operand.<no memory space> [shape: f32[1,1], index: 8, kind: input, shape index: {}]   ;;  %s2523_s9 = inlined_call_operand.hbm [shape: f32[8,128], index: 9, kind: output, shape index: {}]  }
   0x1   :  { %v14_v0 = vstv %s2522_s8 }
   0x2   :  { %15 = vst [vmem:[#allocation4] sm:$0x1] %v14_v0 }
   0x3   :  { %16 = vsyncpa [#allocation6], 0 }
   0x4   :  { %17 = vsyncpa [#allocation7], 0  ;;  %s2107_s11 = smov [#allocation5]  }
   0x5   :  { %s25_s12 = sshll.u32 %s2107_s11, 4  ;;  %s26_s12 = int_to_ptr.vmem [resolvable:$true] %s25_s12 }
   0x6   :  { %s2071_s13 = scalar_lea.vmem %s26_s12, 128  ;;  %p2076_p1 = scmp.lt.s32.totalorder %s26_s12, %s26_s12 }
   0x7   :  { %p2072_p0 = scmp.ne.s32.totalorder %s26_s12, %s2071_s13  ;;  %p2077_p2 = scmp.lt.s32.totalorder %s2071_s13, %s2071_s13 }
   0x9   :  { %p2078_p3 = por %p2077_p2, %p2076_p1 }
   0xb   :  { %p2079_p4 = pnand %p2078_p3, %p2072_p0 }
   0xd   :  { %2082 = shalt.err (!%p2079_p4)
}
   0xe   :  { %s2108_s14 = smov 64   ;;  %s2109_s15 = smov 4  }
   0xf   :  { %31 = dma.hbm_to_vmem [thread:$0]  %s2515_s1, 128, %s26_s12, [#allocation6], %s2108_s14, %s2108_s14, %s2109_s15  }
  0x10   :  { %2103 = dma.done.wait [#allocation6], 128  }
  0x11   :  { %2104 = vsyncadd [#allocation6], 4294967168  ;;  %v2110_v1 = vmov 0.0   ;;  %vm2111_vm0 = vmmov 0   ;;  %v2112_v2 = vmov 0   ;;  %v1916_v3 = vld [vmem:[#allocation5] sm:$0xff]  }
  0x12   :  { %1765 = vmatprep.subr.bf16.mxu1 %v2110_v1  ;;  %1769 = vmatprep.mubr.msk.bf16.mxu1 %vm2111_vm0, %v2110_v1  ;;  %v2182_v4 = vld [vmem:[%s2516_s2 + $0x8] sm:$0xff]   ;;  %vm97_vm1 = vcmask 130048   ;;  %v1918_v5 = vld [vmem:[%s2514_s0] sm:$0xff]   ;;  %vm196_vm2 = vcmask 261120   ;;  %v1921_v50 = vld [vmem:[%s2514_s0 + $0x10] sm:$0xff]   ;;  %vm272_vm3 = vcmask 257024  }
  0x13   :  { %1914 = vset.pattern.permute.xlu1 %v2112_v2  ;;  %1915 = vset.pattern.permute.xlu0 %v2112_v2  ;;  %v1919_v6 = vld [vmem:[%s2514_s0 + $0x8] sm:$0xff]   ;;  %v2196_v7 = vld [vmem:[%s2516_s2] sm:$0xff]   ;;  %v1922_v51 = vld [vmem:[%s2514_s0 + $0x18] sm:$0xff]   ;;  %s2114_s17 = smov 96  }
  0x14   :  { %1755 = vmatprep.subr.bf16.mxu0 %v1916_v3  ;;  %1766 = vmatpush3.bf16.msra.mxu1 %v2182_v4  ;;  %v2218_v9 = vld [vmem:[%s2517_s3] ss:$0 sm:$0xff]  ;;  %s2113_s3 = smov 32  }
  0x15   :  { %1756 = vmatpush3.bf16.msra.mxu0 %v1916_v3  ;;  %1757 = vmatprep.mubr.msk.bf16.mxu0 %vm97_vm1, %v1918_v5 }
  0x16   :  { %1767 = vmatprep.subr.bf16.mxu1 %v2110_v1  ;;  %1781 = vmatprep.subr.bf16.mxu0 %v2110_v1 }
  0x18   :  { %1758 = vmatmul.mubr.msk.bf16.vlgmr.msra.gmra.mxu0 %vm97_vm1, %v1919_v6  ;;  %1768 = vmatpush3.bf16.msra.mxu1 %v2196_v7 }
  0x19   :  { %1782 = vmatpush3.bf16.msra.mxu0 %v2182_v4  ;;  %1773 = vmatprep.subr.bf16.mxu1 %v2110_v1 }
  0x1a   :  { %1783 = vmatprep.subr.bf16.mxu0 %v2110_v1  ;;  %1761 = vmatprep.mubr.msk.bf16.mxu0 %vm97_vm1, %v1921_v50 }
  0x1b   :  { %1770 = vmatmul.mubr.bf16.vlgmr.msra.gmra.mxu1 %v2112_v2 }
  0x1c   :  { %1774 = vmatpush3.bf16.msra.mxu1 %v2182_v4  ;;  %1777 = vmatprep.mubr.msk.bf16.mxu1 %vm2111_vm0, %v2110_v1 }
  0x1d   :  { %1775 = vmatprep.subr.bf16.mxu1 %v2110_v1  ;;  %1784 = vmatpush3.bf16.msra.mxu0 %v2196_v7 }
  0x1e   :  { %1797 = vmatprep.subr.bf16.mxu0 %v2110_v1 }
  0x20   :  { %1776 = vmatpush3.bf16.msra.mxu1 %v2196_v7  ;;  %1762 = vmatmul.mubr.msk.bf16.gmra.mxu0 %vm97_vm1, %v1922_v51 }
  0x21   :  { %1789 = vmatprep.subr.bf16.mxu1 %v2110_v1  ;;  %1785 = vmatprep.mubr.msk.bf16.mxu0 %vm2111_vm0, %v2110_v1 }
  0xd8   :  { %v2213_v8 = vpop.f32.mrf.mxu0 }
  0xd9   :  { %v153_v61 = vadd.f32 %v2213_v8, %v2218_v9 }
  0xda   :  { %v144_v10 = vpop.f32.mrf.mxu0 }
  0xdb   :  { %v145_v11 = vadd.f32 %v2218_v9, %v144_v10  ;;  %v234_v12 = vpop.f32.mrf.mxu1 }
  0xdc   :  { %v2235_v32 = vpop.f32.mrf.mxu0 }
  0xdd   :  { %v240_v13 = vadd.f32 %v234_v12, %v145_v11  ;;  %v1771_v14 = vpop.f32.mrf.mxu1 }
  0xde   :  { %v147_v33 = vpop.f32.mrf.mxu0 }
  0xdf   :  { %1931 = vtanh.f32 %v240_v13  ;;  %v237_v15 = vpop.f32.mrf.mxu1  ;;  %v1634_v18 = vmul.f32 -1.442695, %v240_v13  ;;  %v148_v34 = vadd.f32 %v2218_v9, %v147_v33 }
  0xe0   :  { %v2262_v57 = vpop.f32.mrf.mxu0 }
  0xe1   :  { %v1772_v16 = vpop.f32.mrf.mxu1  ;;  %1933 = vpow2.f32 %v1634_v18 }
  0xe2   :  { %v2264_v58 = vpop.f32.mrf.mxu0 }
  0xe4   :  { %v2266_v59 = vpop.f32.mrf.mxu0 }
  0xe6   :  { %v2268_v60 = vpop.f32.mrf.mxu0 }
  0xec   :  { %v1932_v17 = vpop.eup %1931 }
  0xed   :  { %250 = vrot.lane.b32.xlu0 %v1932_v17, %s2108_s14 }
  0xee   :  { %v1934_v19 = vpop.eup %1933 }
  0xef   :  { %v244_v20 = vadd.f32 1.0, %v1934_v19 }
  0xf1   :  { %1935 = vrcp.f32 %v244_v20 }
  0xfe   :  { %v1936_v21 = vpop.eup %1935 }
  0xff   :  { %v248_v24 = vmul.f32 0.0, %v1936_v21 }
 0x15f   :  { %v251_v22 = vpop.permute.xlu0 %250 }
 0x160   :  { %v253_v23 = vmul.f32 %v1936_v21, %v251_v22 }
 0x162   :  { %255 = vrot.lane.b32.xlu0 %v253_v23, %s2113_s3  ;;  %v156_v23 = vadd.f32 %v2235_v32, %v2218_v9 }
 0x1d4   :  { %v256_v25 = vpop.permute.xlu0 %255 }
 0x1d5   :  { %v258_v26 = vadd.f32 %v256_v25, %v248_v24 }
 0x1d7   :  { %1937 = vtanh.f32 %v258_v26 }
 0x1e4   :  { %v1938_v27 = vpop.eup %1937 }
 0x1e5   :  { %261 = vrot.lane.b32.xlu1 %v1938_v27, %s2108_s14 }
 0x257   :  { %v262_v28 = vpop.permute.xlu1 %261 }
 0x258   :  { %v264_v29 = vmul.f32 %v1936_v21, %v262_v28 }
 0x25a   :  { %v2224_v30 = vpack.c.bf16 %v264_v29, %v264_v29 }
 0x25c   :  { %276 = vrot.lane.b32.xlu1 %v2224_v30, %s2113_s3 }
 0x2ce   :  { %v277_v31 = vpop.permute.xlu1 %276 }
 0x2cf   :  { %1778 = vmatmul.mubr.msk.bf16.vlgmr.msra.gmra.mxu1 %vm196_vm2, %v277_v31 }
 0x2d0   :  { %1790 = vmatpush3.bf16.msra.mxu1 %v2182_v4  ;;  %1793 = vmatprep.mubr.msk.bf16.mxu1 %vm2111_vm0, %v2110_v1 }
 0x2d1   :  { %1791 = vmatprep.subr.bf16.mxu1 %v2110_v1 }
 0x2d4   :  { %1792 = vmatpush3.bf16.msra.mxu1 %v2196_v7 }
 0x2d5   :  { %1805 = vmatprep.subr.bf16.mxu1 %v2110_v1 }
 0x38f   :  { %v315_v35 = vpop.f32.mrf.mxu1 }
 0x390   :  { %v321_v36 = vadd.f32 %v315_v35, %v148_v34 }
 0x391   :  { %v1779_v37 = vpop.f32.mrf.mxu1 }
 0x392   :  { %1939 = vtanh.f32 %v321_v36  ;;  %v1637_v41 = vmul.f32 -1.442695, %v321_v36 }
 0x393   :  { %v318_v38 = vpop.f32.mrf.mxu1 }
 0x394   :  { %1941 = vpow2.f32 %v1637_v41 }
 0x395   :  { %v1780_v39 = vpop.f32.mrf.mxu1 }
 0x39f   :  { %v1940_v40 = vpop.eup %1939 }
 0x3a0   :  { %331 = vrot.lane.b32.xlu0 %v1940_v40, %s2108_s14 }
 0x3a1   :  { %v1942_v42 = vpop.eup %1941 }
 0x3a2   :  { %v325_v43 = vadd.f32 1.0, %v1942_v42 }
 0x3a4   :  { %1943 = vrcp.f32 %v325_v43 }
 0x3b1   :  { %v1944_v44 = vpop.eup %1943 }
 0x3b2   :  { %v329_v47 = vmul.f32 %v1944_v44, %v258_v26 }
 0x412   :  { %v332_v45 = vpop.permute.xlu0 %331 }
 0x413   :  { %v334_v46 = vmul.f32 %v1944_v44, %v332_v45  ;;  %v161_v45 = vadd.f32 %v2218_v9, %v2264_v58 }
 0x415   :  { %336 = vrot.lane.b32.xlu1 %v334_v46, %s2113_s3 }
 0x487   :  { %v337_v48 = vpop.permute.xlu1 %336 }
 0x488   :  { %v339_v49 = vadd.f32 %v337_v48, %v329_v47 }
 0x48a   :  { %1945 = vtanh.f32 %v339_v49 }
 0x497   :  { %v1946_v52 = vpop.eup %1945 }
 0x498   :  { %342 = vrot.lane.b32.xlu0 %v1946_v52, %s2108_s14 }
 0x50a   :  { %v343_v53 = vpop.permute.xlu0 %342 }
 0x50b   :  { %v345_v54 = vmul.f32 %v1944_v44, %v343_v53 }
 0x50d   :  { %v2251_v55 = vpack.c.bf16 %v345_v54, %v345_v54 }
 0x50f   :  { %357 = vrot.lane.b32.xlu1 %v2251_v55, %s2113_s3 }
 0x581   :  { %v358_v56 = vpop.permute.xlu1 %357 }
 0x582   :  { %1786 = vmatmul.mubr.msk.bf16.vlgmr.msra.gmra.mxu0 %vm196_vm2, %v358_v56 }
 0x583   :  { %1798 = vmatpush3.bf16.msra.mxu0 %v2182_v4  ;;  %1801 = vmatprep.mubr.msk.bf16.mxu0 %vm2111_vm0, %v2110_v1 }
 0x584   :  { %1799 = vmatprep.subr.bf16.mxu0 %v2110_v1 }
 0x587   :  { %1800 = vmatpush3.bf16.msra.mxu0 %v2196_v7 }
 0x588   :  { %1813 = vmatprep.subr.bf16.mxu0 %v2110_v1 }
 0x642   :  { %v396_v62 = vpop.f32.mrf.mxu0 }
 0x643   :  { %v402_v63 = vadd.f32 %v396_v62, %v153_v61 }
 0x644   :  { %v1787_v0 = vpop.f32.mrf.mxu0 }
 0x645   :  { %1947 = vtanh.f32 %v402_v63  ;;  %v1640_v10 = vmul.f32 -1.442695, %v402_v63 }
 0x646   :  { %v399_v3 = vpop.f32.mrf.mxu0 }
 0x647   :  { %1949 = vpow2.f32 %v1640_v10 }
 0x648   :  { %v1788_v5 = vpop.f32.mrf.mxu0 }
 0x652   :  { %v1948_v6 = vpop.eup %1947 }
 0x653   :  { %412 = vrot.lane.b32.xlu0 %v1948_v6, %s2108_s14 }
 0x654   :  { %v1950_v11 = vpop.eup %1949 }
 0x655   :  { %v406_v12 = vadd.f32 1.0, %v1950_v11 }
 0x657   :  { %1951 = vrcp.f32 %v406_v12  ;;  %v164_v12 = vadd.f32 %v2218_v9, %v2268_v60 }
 0x664   :  { %v1952_v13 = vpop.eup %1951 }
 0x665   :  { %v410_v8 = vmul.f32 %v1952_v13, %v339_v49 }
 0x6c5   :  { %v413_v14 = vpop.permute.xlu0 %412 }
 0x6c6   :  { %v415_v15 = vmul.f32 %v1952_v13, %v413_v14 }
 0x6c8   :  { %417 = vrot.lane.b32.xlu1 %v415_v15, %s2113_s3 }
 0x73a   :  { %v418_v16 = vpop.permute.xlu1 %417 }
 0x73b   :  { %v420_v17 = vadd.f32 %v418_v16, %v410_v8 }
 0x73d   :  { %1953 = vtanh.f32 %v420_v17 }
 0x74a   :  { %v1954_v18 = vpop.eup %1953 }
 0x74b   :  { %423 = vrot.lane.b32.xlu0 %v1954_v18, %s2108_s14 }
 0x7bd   :  { %v424_v19 = vpop.permute.xlu0 %423 }
 0x7be   :  { %v426_v20 = vmul.f32 %v1952_v13, %v424_v19 }
 0x7c0   :  { %v2275_v21 = vpack.c.bf16 %v426_v20, %v426_v20 }
 0x7c2   :  { %438 = vrot.lane.b32.xlu1 %v2275_v21, %s2113_s3 }
 0x834   :  { %v439_v22 = vpop.permute.xlu1 %438 }
 0x835   :  { %1794 = vmatmul.mubr.msk.bf16.vlgmr.msra.gmra.mxu1 %vm196_vm2, %v439_v22 }
 0x836   :  { %1806 = vmatpush3.bf16.msra.mxu1 %v2182_v4  ;;  %1809 = vmatprep.mubr.msk.bf16.mxu1 %vm2111_vm0, %v2110_v1 }
 0x837   :  { %1807 = vmatprep.subr.bf16.mxu1 %v2110_v1 }
 0x83a   :  { %1808 = vmatpush3.bf16.msra.mxu1 %v2196_v7 }
 0x83b   :  { %1821 = vmatprep.subr.bf16.mxu1 %v2110_v1 }
 0x8f5   :  { %v477_v24 = vpop.f32.mrf.mxu1 }
 0x8f6   :  { %v483_v25 = vadd.f32 %v477_v24, %v156_v23 }
 0x8f7   :  { %v1795_v26 = vpop.f32.mrf.mxu1 }
 0x8f8   :  { %1955 = vtanh.f32 %v483_v25  ;;  %v1643_v31 = vmul.f32 -1.442695, %v483_v25 }
 0x8f9   :  { %v480_v27 = vpop.f32.mrf.mxu1 }
 0x8fa   :  { %1957 = vpow2.f32 %v1643_v31  ;;  %v169_v31 = vadd.f32 %v2262_v57, %v2218_v9 }
 0x8fb   :  { %v1796_v28 = vpop.f32.mrf.mxu1 }
 0x905   :  { %v1956_v29 = vpop.eup %1955 }
 0x906   :  { %493 = vrot.lane.b32.xlu0 %v1956_v29, %s2108_s14 }
 0x907   :  { %v1958_v33 = vpop.eup %1957 }
 0x908   :  { %v487_v34 = vadd.f32 1.0, %v1958_v33 }
 0x90a   :  { %1959 = vrcp.f32 %v487_v34 }
 0x917   :  { %v1960_v35 = vpop.eup %1959 }
 0x918   :  { %v491_v32 = vmul.f32 %v1960_v35, %v420_v17 }
 0x978   :  { %v494_v36 = vpop.permute.xlu0 %493 }
 0x979   :  { %v496_v37 = vmul.f32 %v1960_v35, %v494_v36 }
 0x97b   :  { %498 = vrot.lane.b32.xlu1 %v496_v37, %s2113_s3 }
 0x9ed   :  { %v499_v38 = vpop.permute.xlu1 %498 }
 0x9ee   :  { %v501_v39 = vadd.f32 %v499_v38, %v491_v32 }
 0x9f0   :  { %1961 = vtanh.f32 %v501_v39 }
 0x9fd   :  { %v1962_v40 = vpop.eup %1961 }
 0x9fe   :  { %504 = vrot.lane.b32.xlu0 %v1962_v40, %s2108_s14 }
 0xa70   :  { %v505_v41 = vpop.permute.xlu0 %504 }
 0xa71   :  { %v507_v42 = vmul.f32 %v1960_v35, %v505_v41 }
 0xa73   :  { %v2291_v43 = vpack.c.bf16 %v507_v42, %v507_v42 }
 0xa75   :  { %519 = vrot.lane.b32.xlu1 %v2291_v43, %s2113_s3 }
 0xae7   :  { %v520_v44 = vpop.permute.xlu1 %519 }
 0xae8   :  { %1802 = vmatmul.mubr.msk.bf16.vlgmr.msra.gmra.mxu0 %vm196_vm2, %v520_v44 }
 0xae9   :  { %1814 = vmatpush3.bf16.msra.mxu0 %v2182_v4  ;;  %1817 = vmatprep.mubr.msk.bf16.mxu0 %vm2111_vm0, %v2110_v1 }
 0xaea   :  { %1815 = vmatprep.subr.bf16.mxu0 %v2110_v1 }
 0xaed   :  { %1816 = vmatpush3.bf16.msra.mxu0 %v2196_v7 }
 0xba8   :  { %v558_v46 = vpop.f32.mrf.mxu0 }
 0xba9   :  { %v564_v47 = vadd.f32 %v558_v46, %v161_v45 }
 0xbaa   :  { %v1803_v48 = vpop.f32.mrf.mxu0 }
 0xbab   :  { %1963 = vtanh.f32 %v564_v47  ;;  %v1646_v52 = vmul.f32 -1.442695, %v564_v47 }
 0xbac   :  { %v561_v49 = vpop.f32.mrf.mxu0 }
 0xbad   :  { %1965 = vpow2.f32 %v1646_v52 }
 0xbae   :  { %v1804_v50 = vpop.f32.mrf.mxu0 }
 0xbb8   :  { %v1964_v51 = vpop.eup %1963 }
 0xbb9   :  { %574 = vrot.lane.b32.xlu0 %v1964_v51, %s2108_s14 }
 0xbba   :  { %v1966_v53 = vpop.eup %1965 }
 0xbbb   :  { %v568_v54 = vadd.f32 1.0, %v1966_v53 }
 0xbbd   :  { %1967 = vrcp.f32 %v568_v54 }
 0xbca   :  { %v1968_v56 = vpop.eup %1967 }
 0xbcb   :  { %v572_v58 = vmul.f32 %v1968_v56, %v501_v39 }
 0xc2b   :  { %v575_v61 = vpop.permute.xlu0 %574 }
 0xc2c   :  { %v577_v62 = vmul.f32 %v1968_v56, %v575_v61  ;;  %v2370_v61 = vld [vmem:[%s2519_s5] sm:$0xff]  }
 0xc2e   :  { %579 = vrot.lane.b32.xlu1 %v577_v62, %s2113_s3 }
 0xca0   :  { %v580_v63 = vpop.permute.xlu1 %579 }
 0xca1   :  { %v582_v0 = vadd.f32 %v580_v63, %v572_v58  ;;  %v172_v58 = vadd.f32 %v2266_v59, %v2218_v9 }
 0xca3   :  { %1969 = vtanh.f32 %v582_v0 }
 0xcb0   :  { %v1970_v3 = vpop.eup %1969 }
 0xcb1   :  { %585 = vrot.lane.b32.xlu0 %v1970_v3, %s2108_s14 }
 0xd23   :  { %v586_v5 = vpop.permute.xlu0 %585 }
 0xd24   :  { %v588_v6 = vmul.f32 %v1968_v56, %v586_v5 }
 0xd26   :  { %v2306_v10 = vpack.c.bf16 %v588_v6, %v588_v6 }
 0xd28   :  { %600 = vrot.lane.b32.xlu1 %v2306_v10, %s2113_s3 }
 0xd9a   :  { %v601_v11 = vpop.permute.xlu1 %600 }
 0xd9b   :  { %1810 = vmatmul.mubr.msk.bf16.vlgmr.msra.gmra.mxu1 %vm196_vm2, %v601_v11  ;;  %v2395_v11 = vld [vmem:[%s2520_s6] ss:$0 sm:$0xff] }
 0xd9c   :  { %1822 = vmatpush3.bf16.msra.mxu1 %v2182_v4  ;;  %1825 = vmatprep.mubr.msk.bf16.mxu1 %vm2111_vm0, %v2110_v1 }
 0xd9d   :  { %1823 = vmatprep.subr.bf16.mxu1 %v2110_v1 }
 0xda0   :  { %1824 = vmatpush3.bf16.msra.mxu1 %v2196_v7 }
 0xda1   :  { %1841 = vmatprep.subr.bf16.mxu1 %v2110_v1 }
 0xe5b   :  { %v639_v13 = vpop.f32.mrf.mxu1 }
 0xe5c   :  { %v645_v14 = vadd.f32 %v639_v13, %v164_v12 }
 0xe5d   :  { %v1811_v15 = vpop.f32.mrf.mxu1 }
 0xe5e   :  { %1971 = vtanh.f32 %v645_v14  ;;  %v1649_v4 = vmul.f32 -1.442695, %v645_v14 }
 0xe5f   :  { %v642_v8 = vpop.f32.mrf.mxu1 }
 0xe60   :  { %1973 = vpow2.f32 %v1649_v4 }
 0xe61   :  { %v1812_v16 = vpop.f32.mrf.mxu1 }
 0xe6b   :  { %v1972_v17 = vpop.eup %1971 }
 0xe6c   :  { %655 = vrot.lane.b32.xlu0 %v1972_v17, %s2108_s14 }
 0xe6d   :  { %v1974_v18 = vpop.eup %1973 }
 0xe6e   :  { %v649_v19 = vadd.f32 1.0, %v1974_v18 }
 0xe70   :  { %1975 = vrcp.f32 %v649_v19 }
 0xe7d   :  { %v1976_v7 = vpop.eup %1975 }
 0xe7e   :  { %v653_v60 = vmul.f32 %v1976_v7, %v582_v0 }
 0xede   :  { %v656_v20 = vpop.permute.xlu0 %655 }
 0xedf   :  { %v658_v22 = vmul.f32 %v1976_v7, %v656_v20 }
 0xee1   :  { %660 = vrot.lane.b32.xlu1 %v658_v22, %s2113_s3 }
 0xf53   :  { %v661_v23 = vpop.permute.xlu1 %660 }
 0xf54   :  { %v663_v24 = vadd.f32 %v661_v23, %v653_v60 }
 0xf56   :  { %1977 = vtanh.f32 %v663_v24 }
 0xf63   :  { %v1978_v25 = vpop.eup %1977 }
 0xf64   :  { %666 = vrot.lane.b32.xlu0 %v1978_v25, %s2108_s14 }
 0xfd6   :  { %v667_v26 = vpop.permute.xlu0 %666 }
 0xfd7   :  { %v669_v27 = vmul.f32 %v1976_v7, %v667_v26 }
 0xfd9   :  { %v2322_v28 = vpack.c.bf16 %v669_v27, %v669_v27 }
 0xfdb   :  { %681 = vrot.lane.b32.xlu1 %v2322_v28, %s2113_s3 }
0x104d   :  { %v682_v29 = vpop.permute.xlu1 %681 }
0x104e   :  { %1818 = vmatmul.mubr.msk.bf16.vlgmr.msra.gmra.mxu0 %vm196_vm2, %v682_v29 }
0x110e   :  { %v720_v33 = vpop.f32.mrf.mxu0 }
0x110f   :  { %v726_v34 = vadd.f32 %v720_v33, %v169_v31 }
0x1110   :  { %v1819_v35 = vpop.f32.mrf.mxu0 }
0x1111   :  { %1979 = vtanh.f32 %v726_v34  ;;  %v1652_v38 = vmul.f32 -1.442695, %v726_v34 }
0x1112   :  { %v723_v36 = vpop.f32.mrf.mxu0 }
0x1113   :  { %1981 = vpow2.f32 %v1652_v38 }
0x1114   :  { %v1820_v37 = vpop.f32.mrf.mxu0 }
0x111e   :  { %v1980_v32 = vpop.eup %1979 }
0x111f   :  { %736 = vrot.lane.b32.xlu0 %v1980_v32, %s2108_s14 }
0x1120   :  { %v1982_v39 = vpop.eup %1981 }
0x1121   :  { %v730_v40 = vadd.f32 1.0, %v1982_v39 }
0x1123   :  { %1983 = vrcp.f32 %v730_v40 }
0x1130   :  { %v1984_v41 = vpop.eup %1983 }
0x1131   :  { %v734_v57 = vmul.f32 %v1984_v41, %v663_v24 }
0x1191   :  { %v737_v42 = vpop.permute.xlu0 %736 }
0x1192   :  { %v739_v44 = vmul.f32 %v1984_v41, %v737_v42 }
0x1194   :  { %741 = vrot.lane.b32.xlu1 %v739_v44, %s2113_s3 }
0x1198   :  { %269 = vrot.lane.b32.xlu1 %v2224_v30, %s2113_s3  ;;  %v1923_v30 = vld [vmem:[%s2518_s4 + $0x8] sm:$0xff]  }
0x1199   :  { %1829 = vmatprep.subr.bf16.mxu0 %v1923_v30 }
0x119a   :  { %1830 = vmatpush3.bf16.msra.mxu0 %v1923_v30 }
0x119c   :  { %431 = vrot.lane.b32.xlu1 %v2275_v21, %s2113_s3  ;;  %v1924_v21 = vld [vmem:[%s2518_s4] sm:$0xff]  }
0x119d   :  { %1831 = vmatprep.subr.bf16.mxu0 %v1924_v21 }
0x119e   :  { %1832 = vmatpush3.bf16.msra.mxu0 %v1924_v21 }
0x119f   :  { %1857 = vmatprep.subr.bf16.mxu0 %v2110_v1 }
0x1206   :  { %v742_v45 = vpop.permute.xlu1 %741 }
0x1207   :  { %v2335_v46 = vadd.f32 %v742_v45, %v734_v57 }
0x1209   :  { %1985 = vtanh.f32 %v2335_v46 }
0x120a   :  { %v270_v47 = vpop.permute.xlu1 %269 }
0x120b   :  { %273 = vst.msk [vmem:[#allocation3] sm:$0xf] %vm272_vm3, %v270_v47 }
0x120e   :  { %v432_v48 = vpop.permute.xlu1 %431 }
0x120f   :  { %435 = vst.msk [vmem:[#allocation3 + $0x8] sm:$0xf] %vm272_vm3, %v432_v48 }
0x1216   :  { %v1986_v49 = vpop.eup %1985 }
0x1217   :  { %747 = vrot.lane.b32.xlu0 %v1986_v49, %s2108_s14 }
0x121b   :  { %350 = vrot.lane.b32.xlu0 %v2251_v55, %s2113_s3 }
0x121f   :  { %512 = vrot.lane.b32.xlu0 %v2291_v43, %s2113_s3  ;;  %v2362_v43 = vld [vmem:[%s2519_s5 + $0x8] sm:$0xff]  }
0x1289   :  { %v748_v50 = vpop.permute.xlu0 %747 }
0x128a   :  { %v750_v51 = vmul.f32 %v1984_v41, %v748_v50 }
0x128c   :  { %v2352_v52 = vpack.c.bf16 %v750_v51, %v750_v51 }
0x128d   :  { %v351_v53 = vpop.permute.xlu0 %350 }
0x128e   :  { %354 = vst.msk [vmem:[#allocation3 + $0x4] sm:$0xf] %vm272_vm3, %v351_v53  ;;  %762 = vrot.lane.b32.xlu1 %v2352_v52, %s2113_s3 }
0x1291   :  { %v513_v54 = vpop.permute.xlu0 %512 }
0x1292   :  { %516 = vst.msk [vmem:[#allocation3 + $0xc] sm:$0xf] %vm272_vm3, %v513_v54 }
0x1295   :  { %v1925_v56 = vld [vmem:[#allocation3] sm:$0xff]  }
0x1296   :  { %1833 = vmatprep.mubr.msk.bf16.mxu0 %vm196_vm2, %v1925_v56 }
0x1299   :  { %v1926_v55 = vld [vmem:[#allocation3 + $0x8] sm:$0xff]  }
0x129a   :  { %1834 = vmatmul.mubr.msk.bf16.vlgmr.msra.gmra.mxu0 %vm196_vm2, %v1926_v55 }
0x129b   :  { %1858 = vmatpush3.bf16.msra.mxu0 %v2362_v43 }
0x129c   :  { %1859 = vmatprep.subr.bf16.mxu0 %v2110_v1 }
0x129f   :  { %1860 = vmatpush3.bf16.msra.mxu0 %v2370_v61 }
0x12a0   :  { %1873 = vmatprep.subr.bf16.mxu0 %v2110_v1 }
0x1300   :  { %v763_v62 = vpop.permute.xlu1 %762 }
0x1301   :  { %1826 = vmatmul.mubr.msk.bf16.vlgmr.msra.gmra.mxu1 %vm196_vm2, %v763_v62 }
0x1302   :  { %1842 = vmatpush3.bf16.msra.mxu1 %v2362_v43  ;;  %1845 = vmatprep.mubr.msk.bf16.mxu1 %vm2111_vm0, %v2110_v1 }
0x1303   :  { %1843 = vmatprep.subr.bf16.mxu1 %v2110_v1 }
0x1306   :  { %1844 = vmatpush3.bf16.msra.mxu1 %v2370_v61 }
0x1307   :  { %1849 = vmatprep.subr.bf16.mxu1 %v2110_v1 }
0x1309   :  { %1846 = vmatmul.mubr.bf16.vlgmr.msra.gmra.mxu1 %v2112_v2 }
0x130a   :  { %1850 = vmatpush3.bf16.msra.mxu1 %v2362_v43  ;;  %1853 = vmatprep.mubr.msk.bf16.mxu1 %vm2111_vm0, %v2110_v1 }
0x130b   :  { %1851 = vmatprep.subr.bf16.mxu1 %v2110_v1 }
0x130e   :  { %1852 = vmatpush3.bf16.msra.mxu1 %v2370_v61 }
0x130f   :  { %1865 = vmatprep.subr.bf16.mxu1 %v2110_v1 }
0x135a   :  { %v2390_v63 = vpop.f32.mrf.mxu0 }
0x135c   :  { %v942_v2 = vpop.f32.mrf.mxu0 }
0x135d   :  { %v943_v13 = vadd.f32 %v2395_v11, %v942_v2 }
0x135e   :  { %v2419_v45 = vpop.f32.mrf.mxu0 }
0x13c1   :  { %v801_v0 = vpop.f32.mrf.mxu1 }
0x13c2   :  { %v807_v3 = vadd.f32 %v801_v0, %v172_v58 }
0x13c3   :  { %v1827_v5 = vpop.f32.mrf.mxu1 }
0x13c4   :  { %v1655_v26 = vmul.f32 -1.442695, %v807_v3 }
0x13c5   :  { %v804_v6 = vpop.f32.mrf.mxu1 }
0x13c7   :  { %v1828_v12 = vpop.f32.mrf.mxu1 }
0x13c9   :  { %v1028_v14 = vpop.f32.mrf.mxu1 }
0x13ca   :  { %v1034_v15 = vadd.f32 %v1028_v14, %v943_v13 }
0x13cb   :  { %v1847_v8 = vpop.f32.mrf.mxu1 }
0x13cc   :  { %1987 = vtanh.f32 %v1034_v15  ;;  %v1670_v17 = vmul.f32 -1.442695, %v1034_v15 }
0x13cd   :  { %v1031_v9 = vpop.f32.mrf.mxu1 }
0x13ce   :  { %1989 = vpow2.f32 %v1670_v17 }
0x13cf   :  { %v1848_v59 = vpop.f32.mrf.mxu1 }
0x13d9   :  { %v1988_v16 = vpop.eup %1987 }
0x13da   :  { %1044 = vrot.lane.b32.xlu0 %v1988_v16, %s2108_s14 }
0x13db   :  { %v1990_v4 = vpop.eup %1989 }
0x13dc   :  { %v1038_v18 = vadd.f32 1.0, %v1990_v4 }
0x13de   :  { %1991 = vrcp.f32 %v1038_v18  ;;  %v951_v18 = vadd.f32 %v2390_v63, %v2395_v11 }
0x13eb   :  { %v1992_v19 = vpop.eup %1991 }
0x13ec   :  { %v1042_v22 = vmul.f32 0.0, %v1992_v19 }
0x144c   :  { %v1045_v7 = vpop.permute.xlu0 %1044 }
0x144d   :  { %v1047_v20 = vmul.f32 %v1992_v19, %v1045_v7 }
0x144f   :  { %1049 = vrot.lane.b32.xlu1 %v1047_v20, %s2113_s3 }
0x14c1   :  { %v1050_v60 = vpop.permute.xlu1 %1049 }
0x14c2   :  { %v1052_v23 = vadd.f32 %v1050_v60, %v1042_v22 }
0x14c4   :  { %1993 = vtanh.f32 %v1052_v23 }
0x14c5   :  { %1995 = vtanh.f32 %v807_v3 }
0x14c6   :  { %1997 = vpow2.f32 %v1655_v26 }
0x14d1   :  { %v1994_v24 = vpop.eup %1993 }
0x14d2   :  { %1055 = vrot.lane.b32.xlu0 %v1994_v24, %s2108_s14  ;;  %v1996_v25 = vpop.eup %1995 }
0x14d3   :  { %v1998_v27 = vpop.eup %1997 }
0x14d4   :  { %v811_v29 = vadd.f32 1.0, %v1998_v27 }
0x14d6   :  { %817 = vrot.lane.b32.xlu0 %v1996_v25, %s2108_s14  ;;  %1999 = vrcp.f32 %v811_v29 }
0x14e3   :  { %v2000_v35 = vpop.eup %1999 }
0x14e4   :  { %v815_v38 = vmul.f32 %v2000_v35, %v2335_v46  ;;  %v945_v46 = vpop.f32.mrf.mxu0 }
0x14e5   :  { %v946_v47 = vadd.f32 %v2395_v11, %v945_v46 }
0x1544   :  { %v1056_v31 = vpop.permute.xlu0 %1055 }
0x1545   :  { %v1058_v33 = vmul.f32 %v1992_v19, %v1056_v31 }
0x1547   :  { %v1060_v34 = vpack.c.bf16 %v1058_v33, %v1058_v33 }
0x1548   :  { %v818_v36 = vpop.permute.xlu0 %817 }
0x1549   :  { %v820_v37 = vmul.f32 %v2000_v35, %v818_v36  ;;  %1062 = vrot.lane.b32.xlu1 %v1060_v34, %s2113_s3 }
0x154b   :  { %822 = vrot.lane.b32.xlu0 %v820_v37, %s2113_s3 }
0x15bb   :  { %v1063_v32 = vpop.permute.xlu1 %1062 }
0x15bc   :  { %1854 = vmatmul.mubr.msk.bf16.vlgmr.msra.gmra.mxu1 %vm196_vm2, %v1063_v32 }
0x15bd   :  { %v823_v39 = vpop.permute.xlu0 %822  ;;  %1866 = vmatpush3.bf16.msra.mxu1 %v2362_v43  ;;  %1869 = vmatprep.mubr.msk.bf16.mxu1 %vm2111_vm0, %v2110_v1 }
0x15be   :  { %v825_v40 = vadd.f32 %v823_v39, %v815_v38  ;;  %1867 = vmatprep.subr.bf16.mxu1 %v2110_v1  ;;  %v954_v39 = vadd.f32 %v2419_v45, %v2395_v11 }
0x15c0   :  { %2001 = vtanh.f32 %v825_v40 }
0x15c1   :  { %1868 = vmatpush3.bf16.msra.mxu1 %v2370_v61 }
0x15c2   :  { %1881 = vmatprep.subr.bf16.mxu1 %v2110_v1 }
0x15cd   :  { %v2002_v41 = vpop.eup %2001 }
0x15ce   :  { %828 = vrot.lane.b32.xlu0 %v2002_v41, %s2108_s14 }
0x15d2   :  { %593 = vrot.lane.b32.xlu0 %v2306_v10, %s2113_s3 }
0x15d6   :  { %755 = vrot.lane.b32.xlu0 %v2352_v52, %s2113_s3 }
0x1640   :  { %v829_v42 = vpop.permute.xlu0 %828 }
0x1641   :  { %v831_v5 = vmul.f32 %v2000_v35, %v829_v42 }
0x1643   :  { %v1695_v2 = vpack.c.bf16 %v831_v5, %v831_v5 }
0x1644   :  { %v594_v44 = vpop.permute.xlu0 %593 }
0x1645   :  { %597 = vst.msk [vmem:[#allocation3 + $0x10] sm:$0xf] %vm272_vm3, %v594_v44 }
0x1648   :  { %v756_v57 = vpop.permute.xlu0 %755 }
0x1649   :  { %759 = vst.msk [vmem:[#allocation3 + $0x18] sm:$0xf] %vm272_vm3, %v756_v57 }
0x167c   :  { %v1101_v48 = vpop.f32.mrf.mxu1 }
0x167d   :  { %v1107_v30 = vadd.f32 %v1101_v48, %v946_v47 }
0x167e   :  { %v1855_v21 = vpop.f32.mrf.mxu1 }
0x167f   :  { %2003 = vtanh.f32 %v1107_v30  ;;  %v1672_v51 = vmul.f32 -1.442695, %v1107_v30 }
0x1680   :  { %v1104_v10 = vpop.f32.mrf.mxu1 }
0x1681   :  { %2005 = vpow2.f32 %v1672_v51 }
0x1682   :  { %v1856_v49 = vpop.f32.mrf.mxu1 }
0x168c   :  { %v2004_v50 = vpop.eup %2003 }
0x168d   :  { %1117 = vrot.lane.b32.xlu1 %v2004_v50, %s2108_s14 }
0x168e   :  { %v2006_v52 = vpop.eup %2005 }
0x168f   :  { %v1111_v53 = vadd.f32 1.0, %v2006_v52 }
0x1691   :  { %2007 = vrcp.f32 %v1111_v53 }
0x169e   :  { %v2008_v54 = vpop.eup %2007 }
0x169f   :  { %v1115_v62 = vmul.f32 %v2008_v54, %v1052_v23 }
0x16ff   :  { %v1118_v56 = vpop.permute.xlu1 %1117 }
0x1700   :  { %v1120_v55 = vmul.f32 %v2008_v54, %v1118_v56 }
0x1702   :  { %1122 = vrot.lane.b32.xlu1 %v1120_v55, %s2113_s3 }
0x1774   :  { %v1123_v58 = vpop.permute.xlu1 %1122 }
0x1775   :  { %v1125_v0 = vadd.f32 %v1123_v58, %v1115_v62 }
0x1777   :  { %2009 = vtanh.f32 %v1125_v0 }
0x1784   :  { %v2010_v3 = vpop.eup %2009 }
0x1785   :  { %1128 = vrot.lane.b32.xlu1 %v2010_v3, %s2108_s14 }
0x1789   :  { %674 = vrot.lane.b32.xlu1 %v2322_v28, %s2113_s3 }
0x178d   :  { %836 = vrot.lane.b32.xlu1 %v1695_v2, %s2113_s3 }
0x17f7   :  { %v1129_v6 = vpop.permute.xlu1 %1128 }
0x17f8   :  { %v1131_v12 = vmul.f32 %v2008_v54, %v1129_v6 }
0x17fa   :  { %v1133_v13 = vpack.c.bf16 %v1131_v12, %v1131_v12 }
0x17fb   :  { %v675_v14 = vpop.permute.xlu1 %674 }
0x17fc   :  { %678 = vst.msk [vmem:[#allocation3 + $0x14] sm:$0xf] %vm272_vm3, %v675_v14  ;;  %1135 = vrot.lane.b32.xlu0 %v1133_v13, %s2113_s3 }
0x17ff   :  { %v837_v15 = vpop.permute.xlu1 %836 }
0x1800   :  { %840 = vst.msk [vmem:[#allocation3 + $0x1c] sm:$0xf] %vm272_vm3, %v837_v15 }
0x1803   :  { %v1929_v8 = vld [vmem:[#allocation3 + $0x10] sm:$0xff]  }
0x1804   :  { %1837 = vmatprep.mubr.msk.bf16.mxu0 %vm196_vm2, %v1929_v8 }
0x1807   :  { %v1930_v9 = vld [vmem:[#allocation3 + $0x18] sm:$0xff]  }
0x1808   :  { %1838 = vmatmul.mubr.msk.bf16.gmra.mxu0 %vm196_vm2, %v1930_v9 }
0x1809   :  { %1861 = vmatprep.mubr.msk.bf16.mxu0 %vm2111_vm0, %v2110_v1 }
0x186e   :  { %v1136_v28 = vpop.permute.xlu0 %1135 }
0x186f   :  { %1862 = vmatmul.mubr.msk.bf16.vlgmr.msra.gmra.mxu0 %vm196_vm2, %v1136_v28 }
0x1870   :  { %1874 = vmatpush3.bf16.msra.mxu0 %v2362_v43  ;;  %1877 = vmatprep.mubr.msk.bf16.mxu0 %vm2111_vm0, %v2110_v1 }
0x1871   :  { %1875 = vmatprep.subr.bf16.mxu0 %v2110_v1 }
0x1874   :  { %1876 = vmatpush3.bf16.msra.mxu0 %v2370_v61 }
0x1875   :  { %1889 = vmatprep.subr.bf16.mxu0 %v2110_v1 }
0x18c8   :  { %v2442_v59 = vpop.f32.mrf.mxu0 }
0x18ca   :  { %v2444_v16 = vpop.f32.mrf.mxu0 }
0x18cb   :  { %v959_v62 = vadd.f32 %v2395_v11, %v2444_v16 }
0x18cc   :  { %v2446_v17 = vpop.f32.mrf.mxu0 }
0x18ce   :  { %v2448_v4 = vpop.f32.mrf.mxu0 }
0x192f   :  { %v1174_v19 = vpop.f32.mrf.mxu0 }
0x1930   :  { %v1180_v7 = vadd.f32 %v1174_v19, %v951_v18 }
0x1931   :  { %v1863_v20 = vpop.f32.mrf.mxu0 }
0x1932   :  { %2011 = vtanh.f32 %v1180_v7  ;;  %v1674_v24 = vmul.f32 -1.442695, %v1180_v7 }
0x1933   :  { %v1177_v22 = vpop.f32.mrf.mxu0 }
0x1934   :  { %2013 = vpow2.f32 %v1674_v24 }
0x1935   :  { %v1864_v60 = vpop.f32.mrf.mxu0 }
0x193f   :  { %v2012_v23 = vpop.eup %2011 }
0x1940   :  { %1190 = vrot.lane.b32.xlu1 %v2012_v23, %s2108_s14  ;;  %v962_v23 = vadd.f32 %v2395_v11, %v2448_v4 }
0x1941   :  { %v2014_v25 = vpop.eup %2013 }
0x1942   :  { %v1184_v26 = vadd.f32 1.0, %v2014_v25 }
0x1944   :  { %2015 = vrcp.f32 %v1184_v26 }
0x1951   :  { %v2016_v27 = vpop.eup %2015 }
0x1952   :  { %v1188_v63 = vmul.f32 %v2016_v27, %v1125_v0 }
0x19b2   :  { %v1191_v29 = vpop.permute.xlu1 %1190 }
0x19b3   :  { %v1193_v31 = vmul.f32 %v2016_v27, %v1191_v29 }
0x19b5   :  { %1195 = vrot.lane.b32.xlu0 %v1193_v31, %s2113_s3 }
0x1a27   :  { %v1196_v33 = vpop.permute.xlu0 %1195 }
0x1a28   :  { %v1198_v34 = vadd.f32 %v1196_v33, %v1188_v63 }
0x1a2a   :  { %2017 = vtanh.f32 %v1198_v34 }
0x1a37   :  { %v2018_v35 = vpop.eup %2017 }
0x1a38   :  { %1201 = vrot.lane.b32.xlu1 %v2018_v35, %s2108_s14 }
0x1aaa   :  { %v1202_v36 = vpop.permute.xlu1 %1201 }
0x1aab   :  { %v1204_v37 = vmul.f32 %v2016_v27, %v1202_v36 }
0x1aad   :  { %v1206_v32 = vpack.c.bf16 %v1204_v37, %v1204_v37 }
0x1aaf   :  { %1208 = vrot.lane.b32.xlu0 %v1206_v32, %s2113_s3 }
0x1b21   :  { %v1209_v38 = vpop.permute.xlu0 %1208 }
0x1b22   :  { %1870 = vmatmul.mubr.msk.bf16.vlgmr.msra.gmra.mxu1 %vm196_vm2, %v1209_v38 }
0x1b23   :  { %1882 = vmatpush3.bf16.msra.mxu1 %v2362_v43  ;;  %1885 = vmatprep.mubr.msk.bf16.mxu1 %vm2111_vm0, %v2110_v1 }
0x1b24   :  { %1883 = vmatprep.subr.bf16.mxu1 %v2110_v1 }
0x1b27   :  { %1884 = vmatpush3.bf16.msra.mxu1 %v2370_v61 }
0x1b28   :  { %1897 = vmatprep.subr.bf16.mxu1 %v2110_v1 }
0x1be2   :  { %v1247_v40 = vpop.f32.mrf.mxu1 }
0x1be3   :  { %v1253_v41 = vadd.f32 %v1247_v40, %v954_v39 }
0x1be4   :  { %v1871_v42 = vpop.f32.mrf.mxu1 }
0x1be5   :  { %2019 = vtanh.f32 %v1253_v41  ;;  %v1676_v47 = vmul.f32 -1.442695, %v1253_v41  ;;  %v967_v41 = vadd.f32 %v2442_v59, %v2395_v11 }
0x1be6   :  { %v1250_v44 = vpop.f32.mrf.mxu1 }
0x1be7   :  { %2021 = vpow2.f32 %v1676_v47 }
0x1be8   :  { %v1872_v57 = vpop.f32.mrf.mxu1 }
0x1bf2   :  { %v2020_v46 = vpop.eup %2019 }
0x1bf3   :  { %1263 = vrot.lane.b32.xlu1 %v2020_v46, %s2108_s14 }
0x1bf4   :  { %v2022_v48 = vpop.eup %2021 }
0x1bf5   :  { %v1257_v30 = vadd.f32 1.0, %v2022_v48 }
0x1bf7   :  { %2023 = vrcp.f32 %v1257_v30 }
0x1c04   :  { %v2024_v21 = vpop.eup %2023 }
0x1c05   :  { %v1261_v45 = vmul.f32 %v2024_v21, %v1198_v34 }
0x1c65   :  { %v1264_v10 = vpop.permute.xlu1 %1263 }
0x1c66   :  { %v1266_v49 = vmul.f32 %v2024_v21, %v1264_v10 }
0x1c68   :  { %1268 = vrot.lane.b32.xlu0 %v1266_v49, %s2113_s3 }
0x1cda   :  { %v1269_v50 = vpop.permute.xlu0 %1268 }
0x1cdb   :  { %v1271_v51 = vadd.f32 %v1269_v50, %v1261_v45 }
0x1cdd   :  { %2025 = vtanh.f32 %v1271_v51 }
0x1cea   :  { %v2026_v52 = vpop.eup %2025 }
0x1ceb   :  { %1274 = vrot.lane.b32.xlu1 %v2026_v52, %s2108_s14 }
0x1d5d   :  { %v1275_v53 = vpop.permute.xlu1 %1274 }
0x1d5e   :  { %v1277_v54 = vmul.f32 %v2024_v21, %v1275_v53 }
0x1d60   :  { %v1279_v56 = vpack.c.bf16 %v1277_v54, %v1277_v54 }
0x1d62   :  { %1281 = vrot.lane.b32.xlu0 %v1279_v56, %s2113_s3 }
0x1dd4   :  { %v1282_v55 = vpop.permute.xlu0 %1281 }
0x1dd5   :  { %1878 = vmatmul.mubr.msk.bf16.vlgmr.msra.gmra.mxu0 %vm196_vm2, %v1282_v55 }
0x1dd6   :  { %1890 = vmatpush3.bf16.msra.mxu0 %v2362_v43  ;;  %1893 = vmatprep.mubr.msk.bf16.mxu0 %vm2111_vm0, %v2110_v1 }
0x1dd7   :  { %1891 = vmatprep.subr.bf16.mxu0 %v2110_v1 }
0x1dda   :  { %1892 = vmatpush3.bf16.msra.mxu0 %v2370_v61 }
0x1e95   :  { %v1320_v58 = vpop.f32.mrf.mxu0 }
0x1e96   :  { %v1326_v0 = vadd.f32 %v1320_v58, %v959_v62  ;;  %v970_v58 = vadd.f32 %v2446_v17, %v2395_v11  ;;  %v1685_v11 = vld [vmem:[%s2521_s7] ss:$0 sm:$0xff]  ;;  %s2115_s7 = smov [#allocation8]  }
0x1e97   :  { %v1879_v3 = vpop.f32.mrf.mxu0 }
0x1e98   :  { %2027 = vtanh.f32 %v1326_v0  ;;  %v1678_v12 = vmul.f32 -1.442695, %v1326_v0 }
0x1e99   :  { %v1323_v5 = vpop.f32.mrf.mxu0 }
0x1e9a   :  { %2029 = vpow2.f32 %v1678_v12 }
0x1e9b   :  { %v1880_v2 = vpop.f32.mrf.mxu0 }
0x1ea5   :  { %v2028_v6 = vpop.eup %2027 }
0x1ea6   :  { %1336 = vrot.lane.b32.xlu1 %v2028_v6, %s2108_s14 }
0x1ea7   :  { %v2030_v13 = vpop.eup %2029 }
0x1ea8   :  { %v1330_v14 = vadd.f32 1.0, %v2030_v13 }
0x1eaa   :  { %2031 = vrcp.f32 %v1330_v14 }
0x1eb7   :  { %v2032_v15 = vpop.eup %2031 }
0x1eb8   :  { %v1334_v28 = vmul.f32 %v2032_v15, %v1271_v51 }
0x1f18   :  { %v1337_v8 = vpop.permute.xlu1 %1336 }
0x1f19   :  { %v1339_v9 = vmul.f32 %v2032_v15, %v1337_v8 }
0x1f1b   :  { %1341 = vrot.lane.b32.xlu0 %v1339_v9, %s2113_s3 }
0x1f8d   :  { %v1342_v16 = vpop.permute.xlu0 %1341 }
0x1f8e   :  { %v1344_v18 = vadd.f32 %v1342_v16, %v1334_v28 }
0x1f90   :  { %2033 = vtanh.f32 %v1344_v18 }
0x1f9d   :  { %v2034_v19 = vpop.eup %2033 }
0x1f9e   :  { %1347 = vrot.lane.b32.xlu1 %v2034_v19, %s2108_s14 }
0x2010   :  { %v1348_v7 = vpop.permute.xlu1 %1347 }
0x2011   :  { %v1350_v20 = vmul.f32 %v2032_v15, %v1348_v7 }
0x2013   :  { %v1352_v22 = vpack.c.bf16 %v1350_v20, %v1350_v20 }
0x2015   :  { %1354 = vrot.lane.b32.xlu0 %v1352_v22, %s2113_s3 }
0x2087   :  { %v1355_v60 = vpop.permute.xlu0 %1354 }
0x2088   :  { %1886 = vmatmul.mubr.msk.bf16.vlgmr.msra.gmra.mxu1 %vm196_vm2, %v1355_v60 }
0x2089   :  { %1898 = vmatpush3.bf16.msra.mxu1 %v2362_v43  ;;  %1901 = vmatprep.mubr.msk.bf16.mxu1 %vm2111_vm0, %v2110_v1 }
0x208a   :  { %1899 = vmatprep.subr.bf16.mxu1 %v2110_v1 }
0x208d   :  { %1900 = vmatpush3.bf16.msra.mxu1 %v2370_v61 }
0x2148   :  { %v1393_v24 = vpop.f32.mrf.mxu1 }
0x2149   :  { %v1399_v25 = vadd.f32 %v1393_v24, %v962_v23 }
0x214a   :  { %v1887_v26 = vpop.f32.mrf.mxu1 }
0x214b   :  { %2035 = vtanh.f32 %v1399_v25  ;;  %v1680_v43 = vmul.f32 -1.442695, %v1399_v25  ;;  %v1686_v25 = vld [vmem:[#allocation4] ss:$0 sm:$0xff] }
0x214c   :  { %v1396_v27 = vpop.f32.mrf.mxu1 }
0x214d   :  { %2037 = vpow2.f32 %v1680_v43 }
0x214e   :  { %v1888_v29 = vpop.f32.mrf.mxu1 }
0x2158   :  { %v2036_v31 = vpop.eup %2035 }
0x2159   :  { %1409 = vrot.lane.b32.xlu1 %v2036_v31, %s2108_s14 }
0x215a   :  { %v2038_v63 = vpop.eup %2037 }
0x215b   :  { %v1403_v33 = vadd.f32 1.0, %v2038_v63 }
0x215d   :  { %2039 = vrcp.f32 %v1403_v33 }
0x216a   :  { %v2040_v1 = vpop.eup %2039 }
0x216b   :  { %v1407_v4 = vmul.f32 %v2040_v1, %v1344_v18 }
0x21cb   :  { %v1410_v34 = vpop.permute.xlu1 %1409 }
0x21cc   :  { %v1412_v61 = vmul.f32 %v2040_v1, %v1410_v34 }
0x21ce   :  { %1414 = vrot.lane.b32.xlu0 %v1412_v61, %s2113_s3 }
0x2240   :  { %v1415_v35 = vpop.permute.xlu0 %1414 }
0x2241   :  { %v1417_v36 = vadd.f32 %v1415_v35, %v1407_v4 }
0x2243   :  { %2041 = vtanh.f32 %v1417_v36 }
0x2250   :  { %v2042_v37 = vpop.eup %2041 }
0x2251   :  { %1420 = vrot.lane.b32.xlu1 %v2042_v37, %s2108_s14 }
0x22c3   :  { %v1421_v32 = vpop.permute.xlu1 %1420 }
0x22c4   :  { %v1423_v38 = vmul.f32 %v2040_v1, %v1421_v32 }
0x22c6   :  { %v1425_v39 = vpack.c.bf16 %v1423_v38, %v1423_v38 }
0x22c8   :  { %1427 = vrot.lane.b32.xlu0 %v1425_v39, %s2113_s3 }
0x233a   :  { %v1428_v40 = vpop.permute.xlu0 %1427 }
0x233b   :  { %1894 = vmatmul.mubr.msk.bf16.vlgmr.msra.gmra.mxu0 %vm196_vm2, %v1428_v40 }
0x23fb   :  { %v1466_v42 = vpop.f32.mrf.mxu0 }
0x23fc   :  { %v1472_v44 = vadd.f32 %v1466_v42, %v967_v41 }
0x23fd   :  { %v1895_v57 = vpop.f32.mrf.mxu0 }
0x23fe   :  { %2043 = vtanh.f32 %v1472_v44  ;;  %v1682_v30 = vmul.f32 -1.442695, %v1472_v44 }
0x23ff   :  { %v1469_v46 = vpop.f32.mrf.mxu0 }
0x2400   :  { %2045 = vpow2.f32 %v1682_v30 }
0x2401   :  { %v1896_v47 = vpop.f32.mrf.mxu0 }
0x240b   :  { %v2044_v48 = vpop.eup %2043 }
0x240c   :  { %1482 = vrot.lane.b32.xlu1 %v2044_v48, %s2108_s14 }
0x240d   :  { %v2046_v21 = vpop.eup %2045 }
0x240e   :  { %v1476_v10 = vadd.f32 1.0, %v2046_v21 }
0x2410   :  { %2047 = vrcp.f32 %v1476_v10 }
0x241d   :  { %v2048_v49 = vpop.eup %2047 }
0x241e   :  { %v1480_v59 = vmul.f32 %v2048_v49, %v1417_v36 }
0x247e   :  { %v1483_v45 = vpop.permute.xlu1 %1482 }
0x247f   :  { %v1485_v50 = vmul.f32 %v2048_v49, %v1483_v45 }
0x2481   :  { %1487 = vrot.lane.b32.xlu0 %v1485_v50, %s2113_s3 }
0x24f3   :  { %v1488_v51 = vpop.permute.xlu0 %1487 }
0x24f4   :  { %v1490_v52 = vadd.f32 %v1488_v51, %v1480_v59 }
0x24f6   :  { %2049 = vtanh.f32 %v1490_v52 }
0x2503   :  { %v2050_v53 = vpop.eup %2049 }
0x2504   :  { %1493 = vrot.lane.b32.xlu1 %v2050_v53, %s2108_s14 }
0x2576   :  { %v1494_v54 = vpop.permute.xlu1 %1493 }
0x2577   :  { %v1496_v56 = vmul.f32 %v2048_v49, %v1494_v54 }
0x2579   :  { %v1498_v55 = vpack.c.bf16 %v1496_v56, %v1496_v56 }
0x257b   :  { %1500 = vrot.lane.b32.xlu0 %v1498_v55, %s2113_s3 }
0x25ed   :  { %v1501_v62 = vpop.permute.xlu0 %1500 }
0x25ee   :  { %1902 = vmatmul.mubr.msk.bf16.vlgmr.msra.gmra.mxu1 %vm196_vm2, %v1501_v62 }
0x26ae   :  { %v1539_v0 = vpop.f32.mrf.mxu1 }
0x26af   :  { %v1545_v3 = vadd.f32 %v1539_v0, %v970_v58 }
0x26b0   :  { %v1903_v5 = vpop.f32.mrf.mxu1 }
0x26b1   :  { %2051 = vtanh.f32 %v1545_v3  ;;  %v1684_v13 = vmul.f32 -1.442695, %v1545_v3 }
0x26b2   :  { %v1542_v2 = vpop.f32.mrf.mxu1 }
0x26b3   :  { %2053 = vpow2.f32 %v1684_v13 }
0x26b4   :  { %v1904_v6 = vpop.f32.mrf.mxu1 }
0x26be   :  { %v2052_v12 = vpop.eup %2051 }
0x26bf   :  { %1555 = vrot.lane.b32.xlu1 %v2052_v12, %s2108_s14 }
0x26c0   :  { %v2054_v14 = vpop.eup %2053 }
0x26c1   :  { %v1549_v15 = vadd.f32 1.0, %v2054_v14 }
0x26c3   :  { %2055 = vrcp.f32 %v1549_v15 }
0x26d0   :  { %v2056_v8 = vpop.eup %2055 }
0x26d1   :  { %v1553_v17 = vmul.f32 %v2056_v8, %v1490_v52 }
0x2731   :  { %v1556_v9 = vpop.permute.xlu1 %1555 }
0x2732   :  { %v1558_v28 = vmul.f32 %v2056_v8, %v1556_v9 }
0x2734   :  { %1560 = vrot.lane.b32.xlu0 %v1558_v28, %s2113_s3 }
0x2738   :  { %1576 = vrot.lane.b32.xlu0 %v1685_v11, %s2114_s17 }
0x27a6   :  { %v1561_v16 = vpop.permute.xlu0 %1560 }
0x27a7   :  { %v1563_v18 = vadd.f32 %v1561_v16, %v1553_v17 }
0x27a9   :  { %2057 = vtanh.f32 %v1563_v18 }
0x27aa   :  { %v1577_v20 = vpop.permute.xlu0 %1576 }
0x27b6   :  { %v2058_v19 = vpop.eup %2057 }
0x27b7   :  { %1566 = vrot.lane.b32.xlu1 %v2058_v19, %s2108_s14  ;;  %s1613_s14 = sshll.u32 %s2115_s7, 4  ;;  %s1614_s14 = int_to_ptr.vmem [resolvable:$true] %s1613_s14 }
0x27b8   :  { %s2083_s8 = scalar_lea.vmem %s1614_s14, 128  ;;  %p2088_p6 = scmp.lt.s32.totalorder %s1614_s14, %s1614_s14 }
0x27b9   :  { %p2084_p5 = scmp.ne.s32.totalorder %s1614_s14, %s2083_s8  ;;  %p2089_p7 = scmp.lt.s32.totalorder %s2083_s8, %s2083_s8 }
0x27bb   :  { %p2090_p8 = por %p2089_p7, %p2088_p6 }
0x27bd   :  { %p2091_p9 = pnand %p2090_p8, %p2084_p5 }
0x2829   :  { %v1567_v7 = vpop.permute.xlu1 %1566 }
0x282a   :  { %v1569_v22 = vmul.f32 %v2056_v8, %v1567_v7 }
0x282c   :  { %v1579_v60 = vmul.f32 %v1577_v20, %v1569_v22 }
0x282e   :  { %1581 = vrot.lane.b32.xlu1 %v1579_v60, %s2113_s3 }
0x28a0   :  { %v1582_v23 = vpop.permute.xlu1 %1581 }
0x28a1   :  { %v1584_v24 = vsel %vm196_vm2, %v1582_v23, 0.0 }
0x28a2   :  { %1585 = vadd.xlane.f32.xlu0 %v1584_v24 }
0x292b   :  { %v1586_v26 = vpop.xlane.xlu0 %1585 }
0x292c   :  { %v1594_v27 = vadd.f32 %v1686_v25, %v1586_v26 }
0x292e   :  { %v1687_v29 = vmul.f32 -1.442695, %v1594_v27 }
0x2930   :  { %2059 = vpow2.f32 %v1687_v29 }
0x293d   :  { %v2060_v31 = vpop.eup %2059 }
0x293e   :  { %v1598_v43 = vadd.f32 1.0, %v2060_v31 }
0x2940   :  { %2061 = vrcp.f32 %v1598_v43 }
0x294d   :  { %v2062_v63 = vpop.eup %2061 }
0x294e   :  { %1603 = vperm.xlu1 %1914, %v2062_v63  }
0x29c9   :  { %v1604_v33 = vpop.permute.xlu1 %1603 }
0x29ca   :  { %1606 = vst [vmem:[#allocation8] sm:$0xff] %v1604_v33 }
0x29cb   :  { %2094 = shalt.err (!%p2091_p9)
}
0x29cc   :  { %1616 = dma.vmem_to_hbm [thread:$0]  %s1614_s14, 128, %s2523_s9, [#allocation7]  }
0x29cd   :  { %2105 = dma.done.wait [#allocation7], 128  }
0x29ce   :  { %2106 = vsyncadd [#allocation7], 4294967168 }
0x29cf   :  { %1620 = vsyncpa [#allocation6], 1 }
0x29d0   :  { %1621 = vsyncpa [#allocation7], 1 }

</bundles_post_ra>
